<compile_context>
chip_gen: v6e
topology: v6e:2x2x1
jax: 0.10.0
libtpu: 0.0.40
codegen_flags: <defaults>
</compile_context>

<pallas_src>
import functools

import jax
import jax.numpy as jnp
from jax.experimental import pallas as pl
from jax.experimental.pallas import tpu as pltpu


# ----------------------------- Pallas kernel -------------------------------

def textcnn_kernel(fs_max, seq_len, batch, n_feat,
                   tok_ref, tab_ref, w_ref, b_ref, m_ref, wfc_ref, bfc_ref,
                   out_ref):
    """Fused embed + conv + ReLU + max-pool + concat + fc for the whole batch.

    tok_ref : (R, 1) int32    flattened token ids, R = batch * seq_len
    tab_ref : (V_pad, E)      embedding table (pad_idx row zeroed)
    w_ref   : (E, fs_max*nF)  tap-major packed conv weights (nF = n * F)
    b_ref   : (1, nF)         concatenated conv biases
    m_ref   : (S, nF)         1/0 valid-position mask per filter-size group
    wfc_ref : (nF, 128)       fc weight (transposed, zero-padded to 128 lanes)
    bfc_ref : (1, 128)        fc bias (zero-padded to 128 lanes)
    out_ref : (B, 128)        lane-dense padded output
    """
    n_rows = batch * seq_len
    v_pad = tab_ref.shape[0]

    # Embedding lookup as a one-hot MXU matmul (exact: a single 1.0 per row).
    tok = tok_ref[...]                                             # (R, 1)
    iota = jax.lax.broadcasted_iota(jnp.int32, (n_rows, v_pad), 1)
    onehot = (iota == tok).astype(jnp.float32)                     # (R, V_pad)
    emb = jnp.dot(onehot, tab_ref[...],
                  preferred_element_type=jnp.float32)              # (R, E)

    # All taps of all filter sizes in one matmul; tap i occupies lane group
    # [i*nF : (i+1)*nF] of the result.
    p = jnp.dot(emb, w_ref[...],
                preferred_element_type=jnp.float32)                # (R, fs_max*nF)

    # Align tap i with output position r via a sublane rotation by -i and sum.
    # Rows that wrap across a sequence (or batch) boundary only reach output
    # positions that are invalid for every filter using that tap; those are
    # zeroed by the mask below.  NOTE: this relies on ReLU making every valid
    # value >= 0 so a zeroed invalid position can never win the max-pool; it
    # would break silently for leaky/no activation or mean-pooling.
    conv = p[:, 0:n_feat]
    for i in range(1, fs_max):
        conv = conv + pltpu.roll(p[:, i * n_feat:(i + 1) * n_feat],
                                 shift=n_rows - i, axis=0)

    # Bias + ReLU, mask invalid tail positions, max-pool over time.
    act = jnp.maximum(conv + b_ref[...], 0.0)                      # (R, nF)
    act = act.reshape(batch, seq_len, n_feat) * m_ref[...]
    pooled = jnp.max(act, axis=1)                                  # (B, nF)

    # Final linear layer (dropout before it is identity); lane-dense store.
    out = jnp.dot(pooled, wfc_ref[...], preferred_element_type=jnp.float32)
    out_ref[...] = (out + bfc_ref[...]).astype(out_ref.dtype)


# ------------------------------ Param packing --------------------------------

def pack_params(conv_ws, conv_bs, fc_w, fc_b, filter_sizes, seq_len,
                out_lane_pad=128):
    """Pack per-filter conv params into one tap-major RHS, plus bias, mask and
    lane-dense-padded fc params."""
    fs_max = max(filter_sizes)
    E = conv_ws[0].shape[1]
    F = conv_ws[0].shape[2]
    n = len(filter_sizes)
    n_feat = n * F

    # Tap-major columns: tap i, filter-group g -> cols [i*nF + g*F : i*nF + (g+1)*F].
    w_all = jnp.zeros((E, fs_max * n_feat), jnp.float32)
    mask_cols = []
    for g, (fs, w) in enumerate(zip(filter_sizes, conv_ws)):
        for i in range(fs):
            w_all = w_all.at[:, i * n_feat + g * F:i * n_feat + (g + 1) * F].set(w[i])
        valid = (jnp.arange(seq_len) < (seq_len - fs + 1)).astype(jnp.float32)
        mask_cols.append(jnp.broadcast_to(valid[:, None], (seq_len, F)))

    b_fused = jnp.concatenate(conv_bs, axis=1)                     # (1, nF)
    mask = jnp.concatenate(mask_cols, axis=1)                      # (S, nF)

    # Lane-dense fc: zero-pad output dim to a full 128-lane store.
    out_dim = fc_w.shape[1]
    fc_w_pad = jnp.zeros((n_feat, out_lane_pad), jnp.float32).at[:, :out_dim].set(fc_w)
    fc_b_pad = jnp.zeros((1, out_lane_pad), jnp.float32).at[:, :out_dim].set(fc_b)
    return w_all, b_fused, mask, fc_w_pad, fc_b_pad


# ------------------------------ Wrapper -------------------------------------

def textcnn_forward(text, emb_table, conv_ws, conv_bs, fc_w, fc_b, filter_sizes,
                    out_lane_pad=128):
    """text: [B, S] int32 token ids; returns [B, output_dim] float32."""
    B, S = text.shape
    V, E = emb_table.shape
    fs_max = max(filter_sizes)
    n_feat = len(filter_sizes) * conv_ws[0].shape[2]
    out_dim = fc_w.shape[1]

    # Pad vocab to a sublane-aligned size for the one-hot matmul K-dim.
    v_pad = max(64, ((V + 7) // 8) * 8)
    table_pad = jnp.zeros((v_pad, E), jnp.float32).at[:V].set(emb_table)

    w_all, b_fused, mask, fc_w_pad, fc_b_pad = pack_params(
        conv_ws, conv_bs, fc_w, fc_b, filter_sizes, S, out_lane_pad)

    tok = text.reshape(B * S, 1).astype(jnp.int32)

    kernel = functools.partial(textcnn_kernel, fs_max, S, B, n_feat)

    # Single full-batch grid step: total VMEM footprint is well under 1 MiB on
    # every generation, and one step amortizes the per-step pipeline overhead
    # that dominated the old 2-step grid on single-TC chips.
    out_pad = pl.pallas_call(
        kernel,
        out_shape=jax.ShapeDtypeStruct((B, out_lane_pad), jnp.float32),
        grid=(1,),
        in_specs=[
            pl.BlockSpec((B * S, 1), lambda g: (0, 0)),
            pl.BlockSpec(table_pad.shape, lambda g: (0, 0)),
            pl.BlockSpec(w_all.shape, lambda g: (0, 0)),
            pl.BlockSpec(b_fused.shape, lambda g: (0, 0)),
            pl.BlockSpec(mask.shape, lambda g: (0, 0)),
            pl.BlockSpec(fc_w_pad.shape, lambda g: (0, 0)),
            pl.BlockSpec(fc_b_pad.shape, lambda g: (0, 0)),
        ],
        out_specs=pl.BlockSpec((B, out_lane_pad), lambda g: (0, 0)),
        compiler_params=pltpu.CompilerParams(
            dimension_semantics=("arbitrary",)),
    )(tok, table_pad, w_all, b_fused, mask, fc_w_pad, fc_b_pad)

    return out_pad[:, :out_dim]


# ------------------------------ Reference -----------------------------------

def textcnn_reference(text, emb_table, conv_ws, conv_bs, fc_w, fc_b, filter_sizes):
    embedded = jnp.take(emb_table, text, axis=0)           # (B, S, E)
    B, S, E = embedded.shape
    pooled = []
    for fs, w, bias in zip(filter_sizes, conv_ws, conv_bs):
        lout = S - fs + 1
        acc = jnp.zeros((B, lout, w.shape[2]), jnp.float32)
        for i in range(fs):
            acc = acc + jnp.einsum("bse,ef->bsf", embedded[:, i:i + lout, :], w[i])
        acc = jax.nn.relu(acc + bias[None, :, :])
        pooled.append(jnp.max(acc, axis=1))
    cat = jnp.concatenate(pooled, axis=1)
    return cat @ fc_w + fc_b


# -------------------------------- Main ---------------------------------------

if __name__ == "__main__":
    # Model hyper-params (small, consistent with the module's forward).
    vocab_size = 50
    embedding_dim = 32
    num_filter = 8
    filter_sizes = (3, 4, 5)
    output_dim = 4
    pad_idx = 0

    batch = 16
    seq = 16

    key = jax.random.PRNGKey(0)
    keys = jax.random.split(key, 3 + 2 * len(filter_sizes) + 2)

    # Deterministic synthetic parameters (not a checkpoint).
    emb_table = 0.1 * jax.random.normal(keys[0], (vocab_size, embedding_dim),
                                        jnp.float32)
    emb_table = emb_table.at[pad_idx].set(0.0)  # padding_idx row zeroed

    conv_ws, conv_bs = [], []
    for i, fs in enumerate(filter_sizes):
        # PyTorch Conv2d weight is [F, 1, fs, E]; store as [fs, E, F] for matmul.
        w = 0.1 * jax.random.normal(keys[1 + 2 * i],
                                    (fs, embedding_dim, num_filter), jnp.float32)
        b = 0.1 * jax.random.normal(keys[2 + 2 * i], (1, num_filter), jnp.float32)
        conv_ws.append(w)
        conv_bs.append(b)

    # PyTorch Linear weight is [O, n*F]; store transposed [n*F, O].
    fc_w = 0.1 * jax.random.normal(keys[-2],
                                   (len(filter_sizes) * num_filter, output_dim),
                                   jnp.float32)
    fc_b = 0.1 * jax.random.normal(keys[-1], (1, output_dim), jnp.float32)

    # Input tokens (include some pad tokens at the sequence tail).
    text = jax.random.randint(jax.random.PRNGKey(1), (batch, seq), 0, vocab_size,
                              dtype=jnp.int32)
    text = text.at[:, -2:].set(pad_idx)

    # TODO(synk): dropout is identity (eval mode); training-time dropout is not
    # implemented in the kernel.
    out = textcnn_forward(text, emb_table, conv_ws, conv_bs, fc_w, fc_b,
                          filter_sizes)
    out = jax.block_until_ready(out)

    ref = textcnn_reference(text, emb_table, conv_ws, conv_bs, fc_w, fc_b,
                            filter_sizes)
    assert out.shape == (batch, output_dim), out.shape
    assert jnp.allclose(out, ref, atol=1e-4, rtol=1e-4), (out, ref)

    print("KERNEL_OK")
</pallas_src>

<mosaic_0001>
module attributes {stable_mosaic.version = 11 : i64} {
  func.func @textcnn_kernel(%arg0: i32, %arg1: memref<256x1xi32, #tpu.memory_space<vmem>>, %arg2: memref<64x32xf32, #tpu.memory_space<vmem>>, %arg3: memref<32x120xf32, #tpu.memory_space<vmem>>, %arg4: memref<1x24xf32, #tpu.memory_space<vmem>>, %arg5: memref<16x24xf32, #tpu.memory_space<vmem>>, %arg6: memref<24x128xf32, #tpu.memory_space<vmem>>, %arg7: memref<1x128xf32, #tpu.memory_space<vmem>>, %arg8: memref<16x128xf32, #tpu.memory_space<vmem>>) attributes {dimension_semantics = [#tpu.dimension_semantics<arbitrary>], iteration_bounds = array<i64: 1>, scalar_prefetch = 0 : i64, scratch_operands = 0 : i64, tpu.core_type = #tpu.core_type<tc>, window_params = [{pipeline_mode = #tpu.pipeline_mode<synchronous>, transform_indices = @transform_0, window_bounds = array<i64: 256, 1>}, {pipeline_mode = #tpu.pipeline_mode<synchronous>, transform_indices = @transform_1, window_bounds = array<i64: 64, 32>}, {pipeline_mode = #tpu.pipeline_mode<synchronous>, transform_indices = @transform_2, window_bounds = array<i64: 32, 120>}, {pipeline_mode = #tpu.pipeline_mode<synchronous>, transform_indices = @transform_3, window_bounds = array<i64: 1, 24>}, {pipeline_mode = #tpu.pipeline_mode<synchronous>, transform_indices = @transform_4, window_bounds = array<i64: 16, 24>}, {pipeline_mode = #tpu.pipeline_mode<synchronous>, transform_indices = @transform_5, window_bounds = array<i64: 24, 128>}, {pipeline_mode = #tpu.pipeline_mode<synchronous>, transform_indices = @transform_6, window_bounds = array<i64: 1, 128>}, {pipeline_mode = #tpu.pipeline_mode<synchronous>, transform_indices = @transform_7, window_bounds = array<i64: 16, 128>}]} {
    %c0 = arith.constant 0 : index
    %c0_0 = arith.constant 0 : index
    %0 = vector.load %arg1[%c0, %c0_0] : memref<256x1xi32, #tpu.memory_space<vmem>>, vector<256x1xi32>
    %1 = tpu.iota {dimensions = array<i32: 1>} : vector<256x64xi32>
    %2 = vector.broadcast %0 : vector<256x1xi32> to vector<256x64xi32>
    %3 = arith.cmpi eq, %1, %2 : vector<256x64xi32>
    %4 = arith.extui %3 : vector<256x64xi1> to vector<256x64xi32>
    %5 = arith.sitofp %4 : vector<256x64xi32> to vector<256x64xf32>
    %c0_1 = arith.constant 0 : index
    %c0_2 = arith.constant 0 : index
    %6 = vector.load %arg2[%c0_1, %c0_2] : memref<64x32xf32, #tpu.memory_space<vmem>>, vector<64x32xf32>
    %cst = arith.constant dense<0.000000e+00> : vector<256x32xf32>
    %7 = tpu.matmul %5, %6, %cst {dimension_numbers = #tpu.dot_dimension_numbers<[1], [0], [0], [1], [0, 0, 1, 1], [], []>} : vector<256x64xf32>, vector<64x32xf32>, vector<256x32xf32> -> vector<256x32xf32>
    %c0_3 = arith.constant 0 : index
    %c0_4 = arith.constant 0 : index
    %8 = vector.load %arg3[%c0_3, %c0_4] : memref<32x120xf32, #tpu.memory_space<vmem>>, vector<32x120xf32>
    %cst_5 = arith.constant dense<0.000000e+00> : vector<256x120xf32>
    %9 = tpu.matmul %7, %8, %cst_5 {dimension_numbers = #tpu.dot_dimension_numbers<[1], [0], [0], [1], [0, 0, 1, 1], [], []>} : vector<256x32xf32>, vector<32x120xf32>, vector<256x120xf32> -> vector<256x120xf32>
    %10 = vector.extract_strided_slice %9 {offsets = [0, 0], sizes = [256, 24], strides = [1, 1]} : vector<256x120xf32> to vector<256x24xf32>
    %11 = vector.extract_strided_slice %9 {offsets = [0, 24], sizes = [256, 24], strides = [1, 1]} : vector<256x120xf32> to vector<256x24xf32>
    %c255_i32 = arith.constant 255 : i32
    %12 = tpu.dynamic_rotate %11 by %c255_i32 dim 0 : vector<256x24xf32>, i32 -> vector<256x24xf32>
    %13 = arith.addf %10, %12 : vector<256x24xf32>
    %14 = vector.extract_strided_slice %9 {offsets = [0, 48], sizes = [256, 24], strides = [1, 1]} : vector<256x120xf32> to vector<256x24xf32>
    %c254_i32 = arith.constant 254 : i32
    %15 = tpu.dynamic_rotate %14 by %c254_i32 dim 0 : vector<256x24xf32>, i32 -> vector<256x24xf32>
    %16 = arith.addf %13, %15 : vector<256x24xf32>
    %17 = vector.extract_strided_slice %9 {offsets = [0, 72], sizes = [256, 24], strides = [1, 1]} : vector<256x120xf32> to vector<256x24xf32>
    %c253_i32 = arith.constant 253 : i32
    %18 = tpu.dynamic_rotate %17 by %c253_i32 dim 0 : vector<256x24xf32>, i32 -> vector<256x24xf32>
    %19 = arith.addf %16, %18 : vector<256x24xf32>
    %20 = vector.extract_strided_slice %9 {offsets = [0, 96], sizes = [256, 24], strides = [1, 1]} : vector<256x120xf32> to vector<256x24xf32>
    %c252_i32 = arith.constant 252 : i32
    %21 = tpu.dynamic_rotate %20 by %c252_i32 dim 0 : vector<256x24xf32>, i32 -> vector<256x24xf32>
    %22 = arith.addf %19, %21 : vector<256x24xf32>
    %c0_6 = arith.constant 0 : index
    %c0_7 = arith.constant 0 : index
    %23 = vector.load %arg4[%c0_6, %c0_7] : memref<1x24xf32, #tpu.memory_space<vmem>>, vector<1x24xf32>
    %24 = vector.broadcast %23 : vector<1x24xf32> to vector<256x24xf32>
    %25 = arith.addf %22, %24 : vector<256x24xf32>
    %cst_8 = arith.constant 0.000000e+00 : f32
    %26 = vector.broadcast %cst_8 : f32 to vector<256x24xf32>
    %27 = arith.maximumf %25, %26 : vector<256x24xf32>
    %28 = vector.shape_cast %27 : vector<256x24xf32> to vector<16x16x24xf32>
    %c0_9 = arith.constant 0 : index
    %c0_10 = arith.constant 0 : index
    %29 = vector.load %arg5[%c0_9, %c0_10] : memref<16x24xf32, #tpu.memory_space<vmem>>, vector<16x24xf32>
    %30 = vector.shape_cast %29 : vector<16x24xf32> to vector<1x16x24xf32>
    %31 = vector.broadcast %30 : vector<1x16x24xf32> to vector<16x16x24xf32>
    %32 = arith.mulf %28, %31 : vector<16x16x24xf32>
    %cst_11 = arith.constant dense<0xFF800000> : vector<16x24xf32>
    %33 = vector.multi_reduction <maximumf>, %32, %cst_11 [1] : vector<16x16x24xf32> to vector<16x24xf32>
    %c0_12 = arith.constant 0 : index
    %c0_13 = arith.constant 0 : index
    %34 = vector.load %arg6[%c0_12, %c0_13] : memref<24x128xf32, #tpu.memory_space<vmem>>, vector<24x128xf32>
    %cst_14 = arith.constant dense<0.000000e+00> : vector<16x128xf32>
    %35 = tpu.matmul %33, %34, %cst_14 {dimension_numbers = #tpu.dot_dimension_numbers<[1], [0], [0], [1], [0, 0, 1, 1], [], []>} : vector<16x24xf32>, vector<24x128xf32>, vector<16x128xf32> -> vector<16x128xf32>
    %c0_15 = arith.constant 0 : index
    %c0_16 = arith.constant 0 : index
    %36 = vector.load %arg7[%c0_15, %c0_16] : memref<1x128xf32, #tpu.memory_space<vmem>>, vector<1x128xf32>
    %37 = vector.broadcast %36 : vector<1x128xf32> to vector<16x128xf32>
    %38 = arith.addf %35, %37 : vector<16x128xf32>
    %c0_17 = arith.constant 0 : index
    %c0_18 = arith.constant 0 : index
    %39 = vector.load %arg8[%c0_17, %c0_18] : memref<16x128xf32, #tpu.memory_space<vmem>>, vector<16x128xf32>
    tpu.vector_store %arg8[%c0_17, %c0_18], %38 {strides = array<i32>} : memref<16x128xf32, #tpu.memory_space<vmem>>, vector<16x128xf32>,
    return
  }
  func.func @transform_0(%arg0: i32) -> (i32, i32) {
    %c0_i32 = arith.constant 0 : i32
    %c0_i32_0 = arith.constant 0 : i32
    %c0_i32_1 = arith.constant 0 : i32
    return %c0_i32, %c0_i32_0 : i32, i32
  }
  func.func @transform_1(%arg0: i32) -> (i32, i32) {
    %c0_i32 = arith.constant 0 : i32
    %c0_i32_0 = arith.constant 0 : i32
    %c0_i32_1 = arith.constant 0 : i32
    return %c0_i32, %c0_i32_0 : i32, i32
  }
  func.func @transform_2(%arg0: i32) -> (i32, i32) {
    %c0_i32 = arith.constant 0 : i32
    %c0_i32_0 = arith.constant 0 : i32
    %c0_i32_1 = arith.constant 0 : i32
    return %c0_i32, %c0_i32_0 : i32, i32
  }
  func.func @transform_3(%arg0: i32) -> (i32, i32) {
    %c0_i32 = arith.constant 0 : i32
    %c0_i32_0 = arith.constant 0 : i32
    %c0_i32_1 = arith.constant 0 : i32
    return %c0_i32, %c0_i32_0 : i32, i32
  }
  func.func @transform_4(%arg0: i32) -> (i32, i32) {
    %c0_i32 = arith.constant 0 : i32
    %c0_i32_0 = arith.constant 0 : i32
    %c0_i32_1 = arith.constant 0 : i32
    return %c0_i32, %c0_i32_0 : i32, i32
  }
  func.func @transform_5(%arg0: i32) -> (i32, i32) {
    %c0_i32 = arith.constant 0 : i32
    %c0_i32_0 = arith.constant 0 : i32
    %c0_i32_1 = arith.constant 0 : i32
    return %c0_i32, %c0_i32_0 : i32, i32
  }
  func.func @transform_6(%arg0: i32) -> (i32, i32) {
    %c0_i32 = arith.constant 0 : i32
    %c0_i32_0 = arith.constant 0 : i32
    %c0_i32_1 = arith.constant 0 : i32
    return %c0_i32, %c0_i32_0 : i32, i32
  }
  func.func @transform_7(%arg0: i32) -> (i32, i32) {
    %c0_i32 = arith.constant 0 : i32
    %c0_i32_0 = arith.constant 0 : i32
    %c0_i32_1 = arith.constant 0 : i32
    return %c0_i32, %c0_i32_0 : i32, i32
  }
}

</mosaic_0001>

<bundles_post_ra>
// kernel: tpu_custom_call.1
= control target key start
LH: loop header
LB: loop body
LE: loop exit
PB: predicated region body
PF: predicated region fallthrough
CT: control target
= control target key end

     0   :  { %v2455_v2 = vmov 0   ;;  %s3897_s0 = inlined_call_operand.vmem [shape: s32[256,1], index: 0, kind: input, shape index: {}]   ;;  %s3898_s1 = inlined_call_operand.vmem [shape: f32[64,32], index: 1, kind: input, shape index: {}]   ;;  %s3899_s2 = inlined_call_operand.vmem [shape: f32[32,120], index: 2, kind: input, shape index: {}]   ;;  %s3900_s3 = inlined_call_operand.vmem [shape: f32[1,24], index: 3, kind: input, shape index: {}]   ;;  %s3901_s4 = inlined_call_operand.vmem [shape: f32[16,24], index: 4, kind: input, shape index: {}]   ;;  %s3902_s5 = inlined_call_operand.vmem [shape: f32[24,128], index: 5, kind: input, shape index: {}]   ;;  %s3903_s6 = inlined_call_operand.vmem [shape: f32[1,128], index: 6, kind: input, shape index: {}]   ;;  %s3904_s7 = inlined_call_operand.hbm [shape: f32[16,128], index: 7, kind: output, shape index: {}]  }
   0x1   :  { %v29_v0 = vld [vmem:[%s3897_s0 + $0x10] sm:$0xff]  ;;  %v27_v1 = vld [vmem:[%s3897_s0] sm:$0xff]  ;;  %2429 = vset.pattern.permute.xlu1 %v2455_v2  ;;  %2428 = vset.pattern.permute.xlu0 %v2455_v2  ;;  %v30_v3 = vld [vmem:[%s3897_s0 + $0x18] sm:$0xff] }
   0x2   :  { %68 = vperm.xlu1 %2429, %v29_v0   ;;  %62 = vperm.xlu0 %2428, %v27_v1   ;;  %v28_v4 = vld [vmem:[%s3897_s0 + $0x8] sm:$0xff]  ;;  %v31_v6 = vld [vmem:[%s3897_s0 + $0x20] sm:$0xff]  ;;  %v260_v7 = vld [vmem:[%s3898_s1 + $0x38] sm:$0xff] }
   0x3   :  { %v32_v5 = vld [vmem:[%s3897_s0 + $0x28] sm:$0xff]  ;;  %v34_v8 = vld [vmem:[%s3897_s0 + $0x38] sm:$0xff]  ;;  %v33_v9 = vld [vmem:[%s3897_s0 + $0x30] sm:$0xff]  ;;  %2290 = vmatprep.subr.mxu0 %v260_v7 }
   0x4   :  { %v259_v10 = vld [vmem:[%s3898_s1 + $0x30] sm:$0xff]  ;;  %2291 = vmatpush3.msra.mxu0 %v260_v7  ;;  %v258_v11 = vld [vmem:[%s3898_s1 + $0x28] sm:$0xff] }
   0x5   :  { %2292 = vmatprep.subr.mxu0 %v259_v10 }
   0x6   :  { %71 = vperm.xlu1 %2429, %v30_v3   ;;  %65 = vperm.xlu0 %2428, %v28_v4  }
   0xa   :  { %77 = vperm.xlu1 %2429, %v32_v5   ;;  %74 = vperm.xlu0 %2428, %v31_v6  }
   0xb   :  { %12 = vsyncpa [#allocation3], 0  ;;  %v36_v12 = vld [vmem:[%s3897_s0 + $0x48] sm:$0xff]  ;;  %v35_v13 = vld [vmem:[%s3897_s0 + $0x40] sm:$0xff]  ;;  %2293 = vmatpush3.msra.mxu0 %v259_v10  ;;  %v59_v43 = vlaneseq  ;;  %vm261_vm0 = vcmask 523264   ;;  %v2456_v47 = vmov 0.0  }
   0xc   :  { %2294 = vmatprep.subr.mxu0 %v258_v11  ;;  %v257_v14 = vld [vmem:[%s3898_s1 + $0x20] sm:$0xff]  ;;  %v256_v15 = vld [vmem:[%s3898_s1 + $0x18] sm:$0xff]  ;;  %v37_v17 = vld [vmem:[%s3897_s0 + $0x50] sm:$0xff]  ;;  %s2458_s17 = smov 104   ;;  %s2459_s18 = smov 80  }
   0xd   :  { %2295 = vmatpush3.msra.mxu0 %v258_v11  ;;  %v38_v16 = vld [vmem:[%s3897_s0 + $0x58] sm:$0xff]  ;;  %v255_v18 = vld [vmem:[%s3898_s1 + $0x10] sm:$0xff]  ;;  %v40_v19 = vld [vmem:[%s3897_s0 + $0x68] sm:$0xff]  ;;  %v2631_v44 = vand.u32 127, %v59_v43  ;;  %s2460_s19 = smov 56   ;;  %s2461_s13 = smov [#allocation2]  }
   0xe   :  { %83 = vperm.xlu1 %2429, %v34_v8   ;;  %80 = vperm.xlu0 %2428, %v33_v9   ;;  %v39_v20 = vld [vmem:[%s3897_s0 + $0x60] sm:$0xff]  ;;  %v254_v21 = vld [vmem:[%s3898_s1 + $0x8] sm:$0xff]  ;;  %v42_v23 = vld [vmem:[%s3897_s0 + $0x78] sm:$0xff] }
   0xf   :  { %2296 = vmatprep.subr.mxu0 %v257_v14  ;;  %v253_v22 = vld [vmem:[%s3898_s1] sm:$0xff]  ;;  %v41_v24 = vld [vmem:[%s3897_s0 + $0x70] sm:$0xff]  ;;  %v44_v25 = vld [vmem:[%s3897_s0 + $0x88] sm:$0xff] }
  0x10   :  { %2297 = vmatpush3.msra.mxu0 %v257_v14  ;;  %v43_v26 = vld [vmem:[%s3897_s0 + $0x80] sm:$0xff]  ;;  %v46_v27 = vld [vmem:[%s3897_s0 + $0x98] sm:$0xff]  ;;  %v45_v28 = vld [vmem:[%s3897_s0 + $0x90] sm:$0xff] }
  0x11   :  { %2298 = vmatprep.subr.mxu0 %v256_v15  ;;  %v48_v29 = vld [vmem:[%s3897_s0 + $0xa8] sm:$0xff]  ;;  %v47_v30 = vld [vmem:[%s3897_s0 + $0xa0] sm:$0xff]  ;;  %v50_v31 = vld [vmem:[%s3897_s0 + $0xb8] sm:$0xff] }
  0x12   :  { %89 = vperm.xlu1 %2429, %v36_v12   ;;  %86 = vperm.xlu0 %2428, %v35_v13   ;;  %v49_v32 = vld [vmem:[%s3897_s0 + $0xb0] sm:$0xff]  ;;  %v52_v33 = vld [vmem:[%s3897_s0 + $0xc8] sm:$0xff]  ;;  %v51_v34 = vld [vmem:[%s3897_s0 + $0xc0] sm:$0xff] }
  0x13   :  { %2299 = vmatpush3.msra.mxu0 %v256_v15  ;;  %v54_v35 = vld [vmem:[%s3897_s0 + $0xd8] sm:$0xff]  ;;  %v53_v36 = vld [vmem:[%s3897_s0 + $0xd0] sm:$0xff]  ;;  %v56_v37 = vld [vmem:[%s3897_s0 + $0xe8] sm:$0xff] }
  0x14   :  { %2300 = vmatprep.subr.mxu0 %v255_v18  ;;  %v55_v38 = vld [vmem:[%s3897_s0 + $0xe0] sm:$0xff]  ;;  %v58_v39 = vld [vmem:[%s3897_s0 + $0xf8] sm:$0xff]  ;;  %v57_v40 = vld [vmem:[%s3897_s0 + $0xf0] sm:$0xff]  ;;  %s2098_s0 = sshll.u32 %s2461_s13, 4  ;;  %s2099_s0 = int_to_ptr.vmem [resolvable:$true] %s2098_s0 }
  0x15   :  { %2301 = vmatpush3.msra.mxu0 %v255_v18  ;;  %v586_v41 = vld [vmem:[%s3899_s2 + $0x18] sm:$0xff]  ;;  %v585_v42 = vld [vmem:[%s3899_s2 + $0x10] sm:$0xff]  ;;  %s2433_s14 = scalar_lea.vmem %s2099_s0, 256  ;;  %p2438_p1 = scmp.lt.s32.totalorder %s2099_s0, %s2099_s0 }
  0x16   :  { %95 = vperm.xlu1 %2429, %v38_v16   ;;  %92 = vperm.xlu0 %2428, %v37_v17   ;;  %p2434_p0 = scmp.ne.s32.totalorder %s2099_s0, %s2433_s14  ;;  %p2439_p2 = scmp.lt.s32.totalorder %s2433_s14, %s2433_s14 }
  0x17   :  { %2302 = vmatprep.subr.mxu0 %v254_v21  ;;  %2354 = vmatprep.subr.mxu1 %v586_v41 }
  0x18   :  { %2303 = vmatpush3.msra.mxu0 %v254_v21  ;;  %2355 = vmatpush3.msra.mxu1 %v586_v41  ;;  %p2440_p3 = por %p2439_p2, %p2438_p1 }
  0x19   :  { %2304 = vmatprep.subr.mxu0 %v253_v22  ;;  %2356 = vmatprep.subr.mxu1 %v585_v42 }
  0x1a   :  { %101 = vperm.xlu1 %2429, %v40_v19   ;;  %98 = vperm.xlu0 %2428, %v39_v20   ;;  %p2441_p4 = pnand %p2440_p3, %p2434_p0 }
  0x1b   :  { %2305 = vmatpush3.msra.mxu0 %v253_v22  ;;  %2357 = vmatpush3.msra.mxu1 %v585_v42 }
  0x1e   :  { %107 = vperm.xlu1 %2429, %v42_v23   ;;  %104 = vperm.xlu0 %2428, %v41_v24  }
  0x22   :  { %113 = vperm.xlu1 %2429, %v44_v25   ;;  %110 = vperm.xlu0 %2428, %v43_v26  }
  0x26   :  { %119 = vperm.xlu1 %2429, %v46_v27   ;;  %116 = vperm.xlu0 %2428, %v45_v28  }
  0x2a   :  { %125 = vperm.xlu1 %2429, %v48_v29   ;;  %122 = vperm.xlu0 %2428, %v47_v30  }
  0x2e   :  { %131 = vperm.xlu1 %2429, %v50_v31   ;;  %128 = vperm.xlu0 %2428, %v49_v32  }
  0x32   :  { %137 = vperm.xlu1 %2429, %v52_v33   ;;  %134 = vperm.xlu0 %2428, %v51_v34  }
  0x36   :  { %143 = vperm.xlu1 %2429, %v54_v35   ;;  %140 = vperm.xlu0 %2428, %v53_v36  }
  0x3a   :  { %149 = vperm.xlu1 %2429, %v56_v37   ;;  %146 = vperm.xlu0 %2428, %v55_v38  }
  0x3e   :  { %155 = vperm.xlu1 %2429, %v58_v39   ;;  %152 = vperm.xlu0 %2428, %v57_v40  }
  0x7d   :  { %v69_v45 = vpop.permute.xlu1 %68  ;;  %v63_v46 = vpop.permute.xlu0 %62 }
  0x7e   :  { %vm157_vm1 = vcmp.eq.s32.totalorder %v2631_v44, %v63_v46  ;;  %vm159_vm2 = vcmp.eq.s32.totalorder %v2631_v44, %v69_v45 }
  0x7f   :  { %v2109_v48 = vsel %vm157_vm1, 1.0, %v2456_v47  ;;  %v2111_v51 = vsel %vm159_vm2, 1.0, %v2456_v47 }
  0x80   :  { %2306 = vmatprep.mubr.msk.f32.mxu0 %vm261_vm0, %v2109_v48 }
  0x81   :  { %v72_v49 = vpop.permute.xlu1 %71  ;;  %v66_v50 = vpop.permute.xlu0 %65 }
  0x82   :  { %vm160_vm3 = vcmp.eq.s32.totalorder %v2631_v44, %v72_v49  ;;  %vm158_vm4 = vcmp.eq.s32.totalorder %v2631_v44, %v66_v50  ;;  %v584_v49 = vld [vmem:[%s3899_s2 + $0x8] sm:$0xff] }
  0x83   :  { %v2110_v52 = vsel %vm158_vm4, 1.0, %v2456_v47  ;;  %v2112_v53 = vsel %vm160_vm3, 1.0, %v2456_v47  ;;  %2358 = vmatprep.subr.mxu1 %v584_v49 }
  0x84   :  { %2307 = vmatmul.mubr.msk.f32.vlgmr.msra.gmra.mxu0 %vm261_vm0, %v2110_v52  ;;  %2359 = vmatpush3.msra.mxu1 %v584_v49 }
  0x85   :  { %v78_v54 = vpop.permute.xlu1 %77  ;;  %v75_v55 = vpop.permute.xlu0 %74  ;;  %2309 = vmatprep.mubr.msk.f32.mxu0 %vm261_vm0, %v2111_v51 }
  0x86   :  { %vm162_vm5 = vcmp.eq.s32.totalorder %v2631_v44, %v78_v54  ;;  %vm161_vm6 = vcmp.eq.s32.totalorder %v2631_v44, %v75_v55 }
  0x87   :  { %v2113_v56 = vsel %vm161_vm6, 1.0, %v2456_v47  ;;  %v2114_v57 = vsel %vm162_vm5, 1.0, %v2456_v47 }
  0x88   :  { %2310 = vmatmul.mubr.msk.f32.gmra.mxu0 %vm261_vm0, %v2112_v53 }
  0x89   :  { %v84_v58 = vpop.permute.xlu1 %83  ;;  %2312 = vmatprep.mubr.msk.f32.mxu0 %vm261_vm0, %v2113_v56  ;;  %v81_v59 = vpop.permute.xlu0 %80 }
  0x8a   :  { %vm164_vm7 = vcmp.eq.s32.totalorder %v2631_v44, %v84_v58  ;;  %vm163_vm8 = vcmp.eq.s32.totalorder %v2631_v44, %v81_v59 }
  0x8b   :  { %v2115_v60 = vsel %vm163_vm8, 1.0, %v2456_v47  ;;  %v2116_v61 = vsel %vm164_vm7, 1.0, %v2456_v47 }
  0x8c   :  { %2313 = vmatmul.mubr.msk.f32.gmra.mxu0 %vm261_vm0, %v2114_v57 }
  0x8d   :  { %v90_v62 = vpop.permute.xlu1 %89  ;;  %2315 = vmatprep.mubr.msk.f32.mxu0 %vm261_vm0, %v2115_v60  ;;  %v87_v63 = vpop.permute.xlu0 %86 }
  0x8e   :  { %vm165_vm9 = vcmp.eq.s32.totalorder %v2631_v44, %v87_v63  ;;  %vm166_vm10 = vcmp.eq.s32.totalorder %v2631_v44, %v90_v62 }
  0x8f   :  { %v2117_v0 = vsel %vm165_vm9, 1.0, %v2456_v47  ;;  %v2118_v3 = vsel %vm166_vm10, 1.0, %v2456_v47 }
  0x90   :  { %2316 = vmatmul.mubr.msk.f32.gmra.mxu0 %vm261_vm0, %v2116_v61 }
  0x91   :  { %v96_v1 = vpop.permute.xlu1 %95  ;;  %2318 = vmatprep.mubr.msk.f32.mxu0 %vm261_vm0, %v2117_v0  ;;  %v93_v2 = vpop.permute.xlu0 %92 }
  0x92   :  { %vm167_vm11 = vcmp.eq.s32.totalorder %v2631_v44, %v93_v2  ;;  %vm168_vm12 = vcmp.eq.s32.totalorder %v2631_v44, %v96_v1 }
  0x93   :  { %v2119_v4 = vsel %vm167_vm11, 1.0, %v2456_v47  ;;  %v2120_v7 = vsel %vm168_vm12, 1.0, %v2456_v47 }
  0x94   :  { %2319 = vmatmul.mubr.msk.f32.gmra.mxu0 %vm261_vm0, %v2118_v3 }
  0x95   :  { %v102_v5 = vpop.permute.xlu1 %101  ;;  %2321 = vmatprep.mubr.msk.f32.mxu0 %vm261_vm0, %v2119_v4  ;;  %v99_v6 = vpop.permute.xlu0 %98 }
  0x96   :  { %vm169_vm13 = vcmp.eq.s32.totalorder %v2631_v44, %v99_v6  ;;  %vm170_vm14 = vcmp.eq.s32.totalorder %v2631_v44, %v102_v5 }
  0x97   :  { %v2121_v8 = vsel %vm169_vm13, 1.0, %v2456_v47  ;;  %v2122_v11 = vsel %vm170_vm14, 1.0, %v2456_v47 }
  0x98   :  { %2322 = vmatmul.mubr.msk.f32.gmra.mxu0 %vm261_vm0, %v2120_v7 }
  0x99   :  { %v108_v9 = vpop.permute.xlu1 %107  ;;  %2324 = vmatprep.mubr.msk.f32.mxu0 %vm261_vm0, %v2121_v8  ;;  %v105_v10 = vpop.permute.xlu0 %104 }
  0x9a   :  { %vm171_vm15 = vcmp.eq.s32.totalorder %v2631_v44, %v105_v10  ;;  %vm172_vm1 = vcmp.eq.s32.totalorder %v2631_v44, %v108_v9 }
  0x9b   :  { %v2123_v12 = vsel %vm171_vm15, 1.0, %v2456_v47  ;;  %v2124_v15 = vsel %vm172_vm1, 1.0, %v2456_v47 }
  0x9c   :  { %2325 = vmatmul.mubr.msk.f32.gmra.mxu0 %vm261_vm0, %v2122_v11 }
  0x9d   :  { %v114_v13 = vpop.permute.xlu1 %113  ;;  %2327 = vmatprep.mubr.msk.f32.mxu0 %vm261_vm0, %v2123_v12  ;;  %v111_v14 = vpop.permute.xlu0 %110 }
  0x9e   :  { %vm173_vm2 = vcmp.eq.s32.totalorder %v2631_v44, %v111_v14  ;;  %vm174_vm3 = vcmp.eq.s32.totalorder %v2631_v44, %v114_v13 }
  0x9f   :  { %v2125_v16 = vsel %vm173_vm2, 1.0, %v2456_v47  ;;  %v2126_v19 = vsel %vm174_vm3, 1.0, %v2456_v47  ;;  %vm587_vm3 = vcmask 261120  }
  0xa0   :  { %2328 = vmatmul.mubr.msk.f32.gmra.mxu0 %vm261_vm0, %v2124_v15 }
  0xa1   :  { %v120_v17 = vpop.permute.xlu1 %119  ;;  %2330 = vmatprep.mubr.msk.f32.mxu0 %vm261_vm0, %v2125_v16  ;;  %v117_v18 = vpop.permute.xlu0 %116 }
  0xa2   :  { %vm175_vm4 = vcmp.eq.s32.totalorder %v2631_v44, %v117_v18  ;;  %vm176_vm5 = vcmp.eq.s32.totalorder %v2631_v44, %v120_v17 }
  0xa3   :  { %v2127_v20 = vsel %vm175_vm4, 1.0, %v2456_v47  ;;  %v2128_v23 = vsel %vm176_vm5, 1.0, %v2456_v47 }
  0xa4   :  { %2331 = vmatmul.mubr.msk.f32.gmra.mxu0 %vm261_vm0, %v2126_v19 }
  0xa5   :  { %v126_v21 = vpop.permute.xlu1 %125  ;;  %2333 = vmatprep.mubr.msk.f32.mxu0 %vm261_vm0, %v2127_v20  ;;  %v123_v22 = vpop.permute.xlu0 %122 }
  0xa6   :  { %vm177_vm6 = vcmp.eq.s32.totalorder %v2631_v44, %v123_v22  ;;  %vm178_vm7 = vcmp.eq.s32.totalorder %v2631_v44, %v126_v21 }
  0xa7   :  { %v2129_v24 = vsel %vm177_vm6, 1.0, %v2456_v47  ;;  %v2130_v27 = vsel %vm178_vm7, 1.0, %v2456_v47  ;;  %vm1820_vm7 = vcmask 195584  }
  0xa8   :  { %2334 = vmatmul.mubr.msk.f32.gmra.mxu0 %vm261_vm0, %v2128_v23 }
  0xa9   :  { %v132_v25 = vpop.permute.xlu1 %131  ;;  %2336 = vmatprep.mubr.msk.f32.mxu0 %vm261_vm0, %v2129_v24  ;;  %v129_v26 = vpop.permute.xlu0 %128 }
  0xaa   :  { %vm179_vm8 = vcmp.eq.s32.totalorder %v2631_v44, %v129_v26  ;;  %vm180_vm9 = vcmp.eq.s32.totalorder %v2631_v44, %v132_v25 }
  0xab   :  { %v2131_v28 = vsel %vm179_vm8, 1.0, %v2456_v47  ;;  %v2132_v31 = vsel %vm180_vm9, 1.0, %v2456_v47  ;;  %vm1991_vm8 = vcmask 1041409   ;;  %vm1993_vm9 = vcmask 1042434  }
  0xac   :  { %2337 = vmatmul.mubr.msk.f32.gmra.mxu0 %vm261_vm0, %v2130_v27 }
  0xad   :  { %v138_v29 = vpop.permute.xlu1 %137  ;;  %2339 = vmatprep.mubr.msk.f32.mxu0 %vm261_vm0, %v2131_v28  ;;  %v135_v30 = vpop.permute.xlu0 %134 }
  0xae   :  { %vm181_vm10 = vcmp.eq.s32.totalorder %v2631_v44, %v135_v30  ;;  %vm182_vm11 = vcmp.eq.s32.totalorder %v2631_v44, %v138_v29 }
  0xaf   :  { %v2133_v32 = vsel %vm181_vm10, 1.0, %v2456_v47  ;;  %v2134_v35 = vsel %vm182_vm11, 1.0, %v2456_v47  ;;  %vm1995_vm10 = vcmask 1043459   ;;  %vm1997_vm11 = vcmask 1044484  }
  0xb0   :  { %2340 = vmatmul.mubr.msk.f32.gmra.mxu0 %vm261_vm0, %v2132_v31 }
  0xb1   :  { %v144_v33 = vpop.permute.xlu1 %143  ;;  %2342 = vmatprep.mubr.msk.f32.mxu0 %vm261_vm0, %v2133_v32  ;;  %v141_v34 = vpop.permute.xlu0 %140 }
  0xb2   :  { %vm183_vm12 = vcmp.eq.s32.totalorder %v2631_v44, %v141_v34  ;;  %vm184_vm13 = vcmp.eq.s32.totalorder %v2631_v44, %v144_v33 }
  0xb3   :  { %v2135_v36 = vsel %vm183_vm12, 1.0, %v2456_v47  ;;  %v2136_v39 = vsel %vm184_vm13, 1.0, %v2456_v47  ;;  %vm1999_vm12 = vcmask 1045509   ;;  %vm2001_vm13 = vcmask 1046534  }
  0xb4   :  { %2343 = vmatmul.mubr.msk.f32.gmra.mxu0 %vm261_vm0, %v2134_v35 }
  0xb5   :  { %v150_v37 = vpop.permute.xlu1 %149  ;;  %2345 = vmatprep.mubr.msk.f32.mxu0 %vm261_vm0, %v2135_v36  ;;  %v147_v38 = vpop.permute.xlu0 %146 }
  0xb6   :  { %vm185_vm14 = vcmp.eq.s32.totalorder %v2631_v44, %v147_v38  ;;  %vm186_vm15 = vcmp.eq.s32.totalorder %v2631_v44, %v150_v37 }
  0xb7   :  { %v2137_v40 = vsel %vm185_vm14, 1.0, %v2456_v47  ;;  %v2138_v45 = vsel %vm186_vm15, 1.0, %v2456_v47  ;;  %vm2003_vm14 = vcmask 1047559  }
  0xb8   :  { %2346 = vmatmul.mubr.msk.f32.gmra.mxu0 %vm261_vm0, %v2136_v39 }
  0xb9   :  { %v156_v41 = vpop.permute.xlu1 %155  ;;  %2348 = vmatprep.mubr.msk.f32.mxu0 %vm261_vm0, %v2137_v40  ;;  %v153_v42 = vpop.permute.xlu0 %152 }
  0xba   :  { %vm188_vm1 = vcmp.eq.s32.totalorder %v2631_v44, %v156_v41  ;;  %vm187_vm2 = vcmp.eq.s32.totalorder %v2631_v44, %v153_v42  ;;  %v583_v44 = vld [vmem:[%s3899_s2] sm:$0xff]  ;;  %s2457_s2 = smov 32  }
  0xbb   :  { %v2140_v46 = vsel %vm188_vm1, 1.0, %v2456_v47  ;;  %v2139_v48 = vsel %vm187_vm2, 1.0, %v2456_v47  ;;  %2360 = vmatprep.subr.mxu1 %v583_v44 }
  0xbc   :  { %2349 = vmatmul.mubr.msk.f32.gmra.mxu0 %vm261_vm0, %v2138_v45  ;;  %2361 = vmatpush3.msra.mxu1 %v583_v44 }
  0xbd   :  { %2351 = vmatprep.mubr.msk.f32.mxu0 %vm261_vm0, %v2139_v48 }
  0xc0   :  { %2352 = vmatmul.mubr.msk.f32.gmra.mxu0 %vm261_vm0, %v2140_v46 }
 0x144   :  { %v2308_v50 = vpop.f32.mrf.mxu0 }
 0x146   :  { %v424_v47 = vpop.f32.mrf.mxu0 }
 0x147   :  { %2362 = vmatprep.mubr.msk.f32.mxu1 %vm587_vm3, %v424_v47 }
 0x148   :  { %v2311_v51 = vpop.f32.mrf.mxu0  ;;  %2363 = vmatmul.mubr.msk.f32.vlgmr.msra.gmra.mxu1 %vm587_vm3, %v2308_v50 }
 0x14a   :  { %v434_v52 = vpop.f32.mrf.mxu0 }
 0x14b   :  { %2365 = vmatprep.mubr.msk.f32.mxu1 %vm587_vm3, %v434_v52 }
 0x14c   :  { %v2314_v53 = vpop.f32.mrf.mxu0  ;;  %2366 = vmatmul.mubr.msk.f32.gmra.mxu1 %vm587_vm3, %v2311_v51 }
 0x14e   :  { %v444_v54 = vpop.f32.mrf.mxu0 }
 0x14f   :  { %2368 = vmatprep.mubr.msk.f32.mxu1 %vm587_vm3, %v444_v54 }
 0x150   :  { %v2317_v55 = vpop.f32.mrf.mxu0  ;;  %2369 = vmatmul.mubr.msk.f32.gmra.mxu1 %vm587_vm3, %v2314_v53 }
 0x152   :  { %v454_v56 = vpop.f32.mrf.mxu0 }
 0x153   :  { %2371 = vmatprep.mubr.msk.f32.mxu1 %vm587_vm3, %v454_v56 }
 0x154   :  { %v2320_v57 = vpop.f32.mrf.mxu0  ;;  %2372 = vmatmul.mubr.msk.f32.gmra.mxu1 %vm587_vm3, %v2317_v55 }
 0x156   :  { %v464_v58 = vpop.f32.mrf.mxu0 }
 0x157   :  { %2374 = vmatprep.mubr.msk.f32.mxu1 %vm587_vm3, %v464_v58 }
 0x158   :  { %v2323_v59 = vpop.f32.mrf.mxu0  ;;  %2375 = vmatmul.mubr.msk.f32.gmra.mxu1 %vm587_vm3, %v2320_v57  ;;  %v2994_v57 = vshrl.u32 %v59_v43, 7 }
 0x15a   :  { %v474_v60 = vpop.f32.mrf.mxu0  ;;  %vm1071_vm0 = vcmp.lt.s32.totalorder %v2994_v57, 7  ;;  %vm1264_vm4 = vcmp.lt.s32.totalorder %v2994_v57, 6  ;;  %vm1650_vm5 = vcmp.lt.s32.totalorder %v2994_v57, 4  ;;  %vm1457_vm6 = vcmp.lt.s32.totalorder %v2994_v57, 5 }
 0x15b   :  { %2377 = vmatprep.mubr.msk.f32.mxu1 %vm587_vm3, %v474_v60 }
 0x15c   :  { %v2326_v61 = vpop.f32.mrf.mxu0  ;;  %2378 = vmatmul.mubr.msk.f32.gmra.mxu1 %vm587_vm3, %v2323_v59 }
 0x15e   :  { %v484_v62 = vpop.f32.mrf.mxu0 }
 0x15f   :  { %2380 = vmatprep.mubr.msk.f32.mxu1 %vm587_vm3, %v484_v62 }
 0x160   :  { %v2329_v63 = vpop.f32.mrf.mxu0  ;;  %2381 = vmatmul.mubr.msk.f32.gmra.mxu1 %vm587_vm3, %v2326_v61 }
 0x162   :  { %v494_v0 = vpop.f32.mrf.mxu0 }
 0x163   :  { %2383 = vmatprep.mubr.msk.f32.mxu1 %vm587_vm3, %v494_v0 }
 0x164   :  { %v2332_v1 = vpop.f32.mrf.mxu0  ;;  %2384 = vmatmul.mubr.msk.f32.gmra.mxu1 %vm587_vm3, %v2329_v63 }
 0x166   :  { %v504_v2 = vpop.f32.mrf.mxu0 }
 0x167   :  { %2386 = vmatprep.mubr.msk.f32.mxu1 %vm587_vm3, %v504_v2 }
 0x168   :  { %v2335_v3 = vpop.f32.mrf.mxu0  ;;  %2387 = vmatmul.mubr.msk.f32.gmra.mxu1 %vm587_vm3, %v2332_v1 }
 0x16a   :  { %v514_v4 = vpop.f32.mrf.mxu0 }
 0x16b   :  { %2389 = vmatprep.mubr.msk.f32.mxu1 %vm587_vm3, %v514_v4 }
 0x16c   :  { %v2338_v5 = vpop.f32.mrf.mxu0  ;;  %2390 = vmatmul.mubr.msk.f32.gmra.mxu1 %vm587_vm3, %v2335_v3 }
 0x16e   :  { %v524_v6 = vpop.f32.mrf.mxu0 }
 0x16f   :  { %2392 = vmatprep.mubr.msk.f32.mxu1 %vm587_vm3, %v524_v6 }
 0x170   :  { %v2341_v7 = vpop.f32.mrf.mxu0  ;;  %2393 = vmatmul.mubr.msk.f32.gmra.mxu1 %vm587_vm3, %v2338_v5 }
 0x172   :  { %v534_v8 = vpop.f32.mrf.mxu0 }
 0x173   :  { %2395 = vmatprep.mubr.msk.f32.mxu1 %vm587_vm3, %v534_v8 }
 0x174   :  { %v2344_v9 = vpop.f32.mrf.mxu0  ;;  %2396 = vmatmul.mubr.msk.f32.gmra.mxu1 %vm587_vm3, %v2341_v7 }
 0x176   :  { %v544_v10 = vpop.f32.mrf.mxu0 }
 0x177   :  { %2398 = vmatprep.mubr.msk.f32.mxu1 %vm587_vm3, %v544_v10 }
 0x178   :  { %v2347_v11 = vpop.f32.mrf.mxu0  ;;  %2399 = vmatmul.mubr.msk.f32.gmra.mxu1 %vm587_vm3, %v2344_v9 }
 0x17a   :  { %v554_v12 = vpop.f32.mrf.mxu0 }
 0x17b   :  { %2401 = vmatprep.mubr.msk.f32.mxu1 %vm587_vm3, %v554_v12 }
 0x17c   :  { %v2350_v13 = vpop.f32.mrf.mxu0  ;;  %2402 = vmatmul.mubr.msk.f32.gmra.mxu1 %vm587_vm3, %v2347_v11 }
 0x17e   :  { %v564_v14 = vpop.f32.mrf.mxu0 }
 0x17f   :  { %2404 = vmatprep.mubr.msk.f32.mxu1 %vm587_vm3, %v564_v14 }
 0x180   :  { %v2353_v15 = vpop.f32.mrf.mxu0  ;;  %2405 = vmatmul.mubr.msk.f32.gmra.mxu1 %vm587_vm3, %v2350_v13 }
 0x182   :  { %v574_v16 = vpop.f32.mrf.mxu0 }
 0x183   :  { %2407 = vmatprep.mubr.msk.f32.mxu1 %vm587_vm3, %v574_v16 }
 0x184   :  { %2408 = vmatmul.mubr.msk.f32.gmra.mxu1 %vm587_vm3, %v2353_v15 }
 0x208   :  { %v2767_v17 = vpop.f32.mrf.mxu1 }
 0x209   :  { %1524 = vrot.lane.b32.xlu0 %v2767_v17, %s2457_s2  ;;  %943 = vrot.lane.b32.xlu1 %v2767_v17, %s2458_s17 }
 0x20a   :  { %v2773_v18 = vpop.f32.mrf.mxu1 }
 0x20c   :  { %v2787_v19 = vpop.f32.mrf.mxu1 }
 0x20d   :  { %1138 = vrot.lane.b32.xlu1 %v2767_v17, %s2459_s18  ;;  %941 = vrot.lane.b32.xlu0 %v2773_v18, %s2458_s17 }
 0x20e   :  { %v2793_v20 = vpop.f32.mrf.mxu1 }
 0x210   :  { %v2803_v21 = vpop.f32.mrf.mxu1 }
 0x211   :  { %1331 = vrot.lane.b32.xlu1 %v2767_v17, %s2460_s19  ;;  %1136 = vrot.lane.b32.xlu0 %v2773_v18, %s2459_s18 }
 0x212   :  { %v2809_v22 = vpop.f32.mrf.mxu1 }
 0x214   :  { %v2823_v23 = vpop.f32.mrf.mxu1 }
 0x215   :  { %1522 = vrot.lane.b32.xlu1 %v2773_v18, %s2457_s2  ;;  %1329 = vrot.lane.b32.xlu0 %v2773_v18, %s2460_s19 }
 0x216   :  { %v2833_v24 = vpop.f32.mrf.mxu1 }
 0x218   :  { %v2843_v25 = vpop.f32.mrf.mxu1 }
 0x219   :  { %1528 = vrot.lane.b32.xlu0 %v2787_v19, %s2457_s2  ;;  %947 = vrot.lane.b32.xlu1 %v2787_v19, %s2458_s17 }
 0x21a   :  { %v2857_v26 = vpop.f32.mrf.mxu1 }
 0x21c   :  { %v2867_v27 = vpop.f32.mrf.mxu1 }
 0x21d   :  { %1142 = vrot.lane.b32.xlu1 %v2787_v19, %s2459_s18  ;;  %945 = vrot.lane.b32.xlu0 %v2793_v20, %s2458_s17 }
 0x21e   :  { %v2873_v28 = vpop.f32.mrf.mxu1 }
 0x220   :  { %v2887_v29 = vpop.f32.mrf.mxu1 }
 0x221   :  { %1335 = vrot.lane.b32.xlu1 %v2787_v19, %s2460_s19  ;;  %1140 = vrot.lane.b32.xlu0 %v2793_v20, %s2459_s18 }
 0x222   :  { %v2893_v30 = vpop.f32.mrf.mxu1 }
 0x224   :  { %v2899_v31 = vpop.f32.mrf.mxu1 }
 0x225   :  { %1526 = vrot.lane.b32.xlu1 %v2793_v20, %s2457_s2  ;;  %1333 = vrot.lane.b32.xlu0 %v2793_v20, %s2460_s19 }
 0x226   :  { %v2905_v32 = vpop.f32.mrf.mxu1 }
 0x228   :  { %v2911_v33 = vpop.f32.mrf.mxu1 }
 0x229   :  { %951 = vrot.lane.b32.xlu1 %v2803_v21, %s2458_s17  ;;  %949 = vrot.lane.b32.xlu0 %v2809_v22, %s2458_s17 }
 0x22a   :  { %v2921_v36 = vpop.f32.mrf.mxu1 }
 0x22c   :  { %v2947_v45 = vpop.f32.mrf.mxu1 }
 0x22d   :  { %1146 = vrot.lane.b32.xlu1 %v2803_v21, %s2459_s18  ;;  %1144 = vrot.lane.b32.xlu0 %v2809_v22, %s2459_s18 }
 0x22e   :  { %v2957_v49 = vpop.f32.mrf.mxu1 }
 0x230   :  { %v2987_v56 = vpop.f32.mrf.mxu1 }
 0x231   :  { %1339 = vrot.lane.b32.xlu1 %v2803_v21, %s2460_s19  ;;  %1337 = vrot.lane.b32.xlu0 %v2809_v22, %s2460_s19 }
 0x232   :  { %v3010_v43 = vpop.f32.mrf.mxu1 }
 0x235   :  { %1532 = vrot.lane.b32.xlu1 %v2803_v21, %s2457_s2  ;;  %955 = vrot.lane.b32.xlu0 %v2823_v23, %s2458_s17 }
 0x239   :  { %1530 = vrot.lane.b32.xlu1 %v2809_v22, %s2457_s2  ;;  %1150 = vrot.lane.b32.xlu0 %v2823_v23, %s2459_s18 }
 0x23d   :  { %1343 = vrot.lane.b32.xlu1 %v2823_v23, %s2460_s19  ;;  %953 = vrot.lane.b32.xlu0 %v2833_v24, %s2458_s17 }
 0x241   :  { %1536 = vrot.lane.b32.xlu1 %v2823_v23, %s2457_s2  ;;  %1148 = vrot.lane.b32.xlu0 %v2833_v24, %s2459_s18 }
 0x245   :  { %1341 = vrot.lane.b32.xlu0 %v2833_v24, %s2460_s19  ;;  %959 = vrot.lane.b32.xlu1 %v2843_v25, %s2458_s17 }
 0x249   :  { %1534 = vrot.lane.b32.xlu0 %v2833_v24, %s2457_s2  ;;  %1154 = vrot.lane.b32.xlu1 %v2843_v25, %s2459_s18 }
 0x24d   :  { %1540 = vrot.lane.b32.xlu0 %v2843_v25, %s2457_s2  ;;  %1347 = vrot.lane.b32.xlu1 %v2843_v25, %s2460_s19 }
 0x251   :  { %1345 = vrot.lane.b32.xlu0 %v2857_v26, %s2460_s19  ;;  %957 = vrot.lane.b32.xlu1 %v2857_v26, %s2458_s17 }
 0x255   :  { %1538 = vrot.lane.b32.xlu0 %v2857_v26, %s2457_s2  ;;  %1152 = vrot.lane.b32.xlu1 %v2857_v26, %s2459_s18 }
 0x259   :  { %1158 = vrot.lane.b32.xlu1 %v2867_v27, %s2459_s18  ;;  %963 = vrot.lane.b32.xlu0 %v2867_v27, %s2458_s17 }
 0x25d   :  { %1351 = vrot.lane.b32.xlu1 %v2867_v27, %s2460_s19  ;;  %961 = vrot.lane.b32.xlu0 %v2873_v28, %s2458_s17 }
 0x261   :  { %1544 = vrot.lane.b32.xlu1 %v2867_v27, %s2457_s2  ;;  %1156 = vrot.lane.b32.xlu0 %v2873_v28, %s2459_s18 }
 0x265   :  { %1542 = vrot.lane.b32.xlu1 %v2873_v28, %s2457_s2  ;;  %1349 = vrot.lane.b32.xlu0 %v2873_v28, %s2460_s19 }
 0x269   :  { %1355 = vrot.lane.b32.xlu0 %v2887_v29, %s2460_s19  ;;  %967 = vrot.lane.b32.xlu1 %v2887_v29, %s2458_s17 }
 0x26d   :  { %1548 = vrot.lane.b32.xlu0 %v2887_v29, %s2457_s2  ;;  %1162 = vrot.lane.b32.xlu1 %v2887_v29, %s2459_s18 }
 0x271   :  { %1160 = vrot.lane.b32.xlu0 %v2893_v30, %s2459_s18  ;;  %965 = vrot.lane.b32.xlu1 %v2893_v30, %s2458_s17 }
 0x275   :  { %1353 = vrot.lane.b32.xlu0 %v2893_v30, %s2460_s19  ;;  %1357 = vrot.lane.b32.xlu1 %v2905_v32, %s2460_s19 }
 0x279   :  { %1546 = vrot.lane.b32.xlu0 %v2893_v30, %s2457_s2  ;;  %1550 = vrot.lane.b32.xlu1 %v2905_v32, %s2457_s2 }
 0x27b   :  { %v2917_v34 = vpop.permute.xlu1 %943  ;;  %v2919_v35 = vpop.permute.xlu0 %1524 }
 0x27c   :  { %v1038_v63 = vrot.slane %v2917_v34, 1  ;;  %v1619_v10 = vrot.slane %v2919_v35, 4 }
 0x27d   :  { %971 = vrot.lane.b32.xlu0 %v2899_v31, %s2458_s17  ;;  %973 = vrot.lane.b32.xlu1 %v2921_v36, %s2458_s17 }
 0x27f   :  { %v2927_v37 = vpop.permute.xlu1 %1138  ;;  %v2929_v38 = vpop.permute.xlu0 %941 }
 0x280   :  { %v3908_v60 = vrot.slane %v2929_v38, 1  ;;  %v1233_v2 = vrot.slane %v2927_v37, 2 }
 0x281   :  { %1166 = vrot.lane.b32.xlu0 %v2899_v31, %s2459_s18  ;;  %1168 = vrot.lane.b32.xlu1 %v2921_v36, %s2459_s18 }
 0x282   :  { %v1102_v3 = vsel %vm1071_vm0, %v3908_v60, %v1038_v63 }
 0x283   :  { %v2935_v39 = vpop.permute.xlu1 %1331  ;;  %v2937_v40 = vpop.permute.xlu0 %1136  ;;  %v1104_v11 = vadd.f32 %v1102_v3, %v2773_v18 }
 0x284   :  { %v3907_v0 = vrot.slane %v2937_v40, 2  ;;  %v1426_v14 = vrot.slane %v2935_v39, 3 }
 0x285   :  { %1359 = vrot.lane.b32.xlu0 %v2899_v31, %s2460_s19  ;;  %1361 = vrot.lane.b32.xlu1 %v2921_v36, %s2460_s19 }
 0x286   :  { %v1295_v7 = vsel %vm1264_vm4, %v3907_v0, %v1233_v2 }
 0x287   :  { %v2943_v41 = vpop.permute.xlu1 %1522  ;;  %v2945_v42 = vpop.permute.xlu0 %1329  ;;  %v1297_v18 = vadd.f32 %v1295_v7, %v1104_v11 }
 0x288   :  { %v3906_v15 = vrot.slane %v2945_v42, 3 }
 0x289   :  { %1552 = vrot.lane.b32.xlu0 %v2899_v31, %s2457_s2  ;;  %1554 = vrot.lane.b32.xlu1 %v2921_v36, %s2457_s2 }
 0x28b   :  { %v2953_v46 = vpop.permute.xlu1 %947  ;;  %v2955_v48 = vpop.permute.xlu0 %1528 }
 0x28c   :  { %v1040_v12 = vrot.slane %v2953_v46, 1 }
 0x28d   :  { %969 = vrot.lane.b32.xlu0 %v2905_v32, %s2458_s17  ;;  %977 = vrot.lane.b32.xlu1 %v2957_v49, %s2458_s17 }
 0x28f   :  { %v2963_v44 = vpop.permute.xlu1 %1142  ;;  %v946_v50 = vpop.permute.xlu0 %945 }
 0x290   :  { %v1039_v1 = vrot.slane %v946_v50, 1  ;;  %v1235_v16 = vrot.slane %v2963_v44, 2 }
 0x291   :  { %1164 = vrot.lane.b32.xlu0 %v2905_v32, %s2459_s18  ;;  %1172 = vrot.lane.b32.xlu1 %v2957_v49, %s2459_s18 }
 0x292   :  { %v1101_v8 = vsel %vm1071_vm0, %v1038_v63, %v1039_v1  ;;  %v1100_v35 = vsel %vm1071_vm0, %v1039_v1, %v1040_v12 }
 0x293   :  { %v2969_v47 = vpop.permute.xlu1 %1335  ;;  %v1141_v51 = vpop.permute.xlu0 %1140  ;;  %v1105_v37 = vadd.f32 %v2767_v17, %v1101_v8 }
 0x294   :  { %v1234_v4 = vrot.slane %v1141_v51, 2  ;;  %v1428_v39 = vrot.slane %v2969_v47, 3  ;;  %v1488_v47 = vsel %vm1457_vm6, %v3906_v15, %v1426_v14 }
 0x295   :  { %975 = vrot.lane.b32.xlu0 %v2911_v33, %s2458_s17  ;;  %1365 = vrot.lane.b32.xlu1 %v2957_v49, %s2460_s19 }
 0x296   :  { %v1294_v34 = vsel %vm1264_vm4, %v1233_v2, %v1234_v4 }
 0x297   :  { %v2975_v52 = vpop.permute.xlu1 %1526  ;;  %v2977_v53 = vpop.permute.xlu0 %1333  ;;  %v1298_v63 = vadd.f32 %v1294_v34, %v1105_v37  ;;  %v1490_v34 = vadd.f32 %v1488_v47, %v1297_v18 }
 0x298   :  { %v1427_v9 = vrot.slane %v2977_v53, 3  ;;  %v1293_v53 = vsel %vm1264_vm4, %v1234_v4, %v1235_v16  ;;  %v1620_v1 = vrot.slane %v2975_v52, 4 }
 0x299   :  { %1170 = vrot.lane.b32.xlu0 %v2911_v33, %s2459_s18  ;;  %1558 = vrot.lane.b32.xlu1 %v2957_v49, %s2457_s2 }
 0x29a   :  { %v1487_v44 = vsel %vm1457_vm6, %v1426_v14, %v1427_v9  ;;  %v1486_v52 = vsel %vm1457_vm6, %v1427_v9, %v1428_v39 }
 0x29b   :  { %v2983_v54 = vpop.permute.xlu1 %951  ;;  %v2985_v55 = vpop.permute.xlu0 %949  ;;  %v1491_v3 = vadd.f32 %v1487_v44, %v1298_v63 }
 0x29c   :  { %v1041_v13 = vrot.slane %v2985_v55, 1  ;;  %v1042_v55 = vrot.slane %v2983_v54, 1  ;;  %v1106_v54 = vadd.f32 %v1100_v35, %v2793_v20  ;;  %v3105_v63 = vpop.f32.mrf.mxu1 }
 0x29d   :  { %1363 = vrot.lane.b32.xlu0 %v2911_v33, %s2460_s19  ;;  %1371 = vrot.lane.b32.xlu1 %v2987_v56, %s2460_s19 }
 0x29e   :  { %v1099_v17 = vsel %vm1071_vm0, %v1040_v12, %v1041_v13  ;;  %v3905_v12 = vrot.slane %v2943_v41, 4  ;;  %v1299_v14 = vadd.f32 %v1293_v53, %v1106_v54  ;;  %v1098_v20 = vsel %vm1071_vm0, %v1041_v13, %v1042_v55 }
 0x29f   :  { %v2996_v58 = vpop.permute.xlu1 %1146  ;;  %v2998_v59 = vpop.permute.xlu0 %1144  ;;  %v1107_v9 = vadd.f32 %v2787_v19, %v1099_v17 }
 0x2a0   :  { %v1236_v46 = vrot.slane %v2998_v59, 2  ;;  %v1237_v2 = vrot.slane %v2996_v58, 2  ;;  %v1621_v58 = vrot.slane %v2955_v48, 4  ;;  %v1492_v35 = vadd.f32 %v1486_v52, %v1299_v14 }
 0x2a1   :  { %1556 = vrot.lane.b32.xlu0 %v2911_v33, %s2457_s2  ;;  %1564 = vrot.lane.b32.xlu1 %v2987_v56, %s2457_s2  ;;  %v1108_v48 = vadd.f32 %v1098_v20, %v2809_v22  ;;  %v1681_v22 = vsel %vm1650_vm5, %v3905_v12, %v1619_v10 }
 0x2a2   :  { %v1291_v13 = vsel %vm1264_vm4, %v1236_v46, %v1237_v2  ;;  %v1683_v14 = vadd.f32 %v1681_v22, %v1490_v34 }
 0x2a3   :  { %v3006_v61 = vpop.permute.xlu1 %1339  ;;  %v3008_v62 = vpop.permute.xlu0 %1337  ;;  %v1301_v52 = vadd.f32 %v1291_v13, %v1108_v48 }
 0x2a4   :  { %v1429_v59 = vrot.slane %v3008_v62, 3  ;;  %v1292_v62 = vsel %vm1264_vm4, %v1235_v16, %v1236_v46  ;;  %v1430_v4 = vrot.slane %v3006_v61, 3  ;;  %v1680_v16 = vsel %vm1650_vm5, %v1619_v10, %v1620_v1 }
 0x2a5   :  { %979 = vrot.lane.b32.xlu0 %v2947_v45, %s2458_s17  ;;  %981 = vrot.lane.b32.xlu1 %v3010_v43, %s2458_s17  ;;  %v1300_v19 = vadd.f32 %v1292_v62, %v1107_v9  ;;  %v1684_v37 = vadd.f32 %v1680_v16, %v1491_v3 }
 0x2a6   :  { %v1485_v61 = vsel %vm1457_vm6, %v1428_v39, %v1429_v59 }
 0x2a7   :  { %v3024_v5 = vpop.permute.xlu1 %1532  ;;  %v3026_v6 = vpop.permute.xlu0 %955  ;;  %v1493_v17 = vadd.f32 %v1485_v61, %v1300_v19 }
 0x2a8   :  { %v1623_v47 = vrot.slane %v3024_v5, 4  ;;  %v1044_v46 = vrot.slane %v3026_v6, 1  ;;  %v3123_v5 = vld [vmem:[%s3900_s3] ss:$0 sm:$0xff] }
 0x2a9   :  { %1174 = vrot.lane.b32.xlu0 %v2947_v45, %s2459_s18  ;;  %1176 = vrot.lane.b32.xlu1 %v3010_v43, %s2459_s18  ;;  %v1723_v9 = vadd.f32 %v3123_v5, %v1684_v37 }
 0x2ab   :  { %v1531_v50 = vpop.permute.xlu1 %1530  ;;  %v3054_v51 = vpop.permute.xlu0 %1150 }
 0x2ac   :  { %v1622_v7 = vrot.slane %v1531_v50, 4  ;;  %v1484_v50 = vsel %vm1457_vm6, %v1429_v59, %v1430_v4  ;;  %v1679_v59 = vsel %vm1650_vm5, %v1620_v1, %v1621_v58  ;;  %v1239_v3 = vrot.slane %v3054_v51, 2 }
 0x2ad   :  { %1367 = vrot.lane.b32.xlu0 %v2947_v45, %s2460_s19  ;;  %1369 = vrot.lane.b32.xlu1 %v3010_v43, %s2460_s19  ;;  %v1685_v20 = vadd.f32 %v1679_v59, %v1492_v35  ;;  %v1755_v59 = vmax.f32 %v1723_v9, 0.0 }
 0x2ae   :  { %v1678_v39 = vsel %vm1650_vm5, %v1621_v58, %v1622_v7  ;;  %v1677_v10 = vsel %vm1650_vm5, %v1622_v7, %v1623_v47  ;;  %v1494_v58 = vadd.f32 %v1484_v50, %v1301_v52 }
 0x2af   :  { %v3081_v8 = vpop.permute.xlu1 %1343  ;;  %v954_v11 = vpop.permute.xlu0 %953  ;;  %v1686_v62 = vadd.f32 %v1678_v39, %v1493_v17 }
 0x2b0   :  { %v1043_v18 = vrot.slane %v954_v11, 1  ;;  %v1432_v13 = vrot.slane %v3081_v8, 3 }
 0x2b1   :  { %1560 = vrot.lane.b32.xlu0 %v2947_v45, %s2457_s2  ;;  %1562 = vrot.lane.b32.xlu1 %v3010_v43, %s2457_s2 }
 0x2b2   :  { %v1096_v1 = vsel %vm1071_vm0, %v1043_v18, %v1044_v46  ;;  %v1097_v11 = vsel %vm1071_vm0, %v1042_v55, %v1043_v18  ;;  %v1687_v55 = vadd.f32 %v1677_v10, %v1494_v58  ;;  %v1725_v18 = vadd.f32 %v3123_v5, %v1686_v62 }
 0x2b3   :  { %v3103_v53 = vpop.permute.xlu1 %1536  ;;  %v1149_v44 = vpop.permute.xlu0 %1148  ;;  %v1109_v34 = vadd.f32 %v2803_v21, %v1097_v11  ;;  %v1110_v35 = vadd.f32 %v1096_v1, %v2833_v24  ;;  %v1722_v21 = vadd.f32 %v3123_v5, %v1683_v14  ;;  %v1724_v24 = vadd.f32 %v3123_v5, %v1685_v20 }
 0x2b4   :  { %v1238_v54 = vrot.slane %v1149_v44, 2  ;;  %v1726_v52 = vadd.f32 %v3123_v5, %v1687_v55  ;;  %v1757_v1 = vmax.f32 %v1725_v18, 0.0  ;;  %v3186_v55 = vld [vmem:[%s3901_s4] sm:$0xff] }
 0x2b5   :  { %983 = vrot.lane.b32.xlu0 %v2987_v56, %s2458_s17  ;;  %987 = vrot.lane.b32.xlu1 %v3105_v63, %s2458_s17  ;;  %v1754_v20 = vmax.f32 %v1722_v21, 0.0  ;;  %v1756_v9 = vmax.f32 %v1724_v24, 0.0 }
 0x2b6   :  { %v1289_v7 = vsel %vm1264_vm4, %v1238_v54, %v1239_v3  ;;  %v1290_v19 = vsel %vm1264_vm4, %v1237_v2, %v1238_v54  ;;  %v1625_v54 = vrot.slane %v3103_v53, 4 }
 0x2b7   :  { %v3134_v16 = vpop.permute.xlu1 %959  ;;  %v1342_v61 = vpop.permute.xlu0 %1341  ;;  %v1302_v50 = vadd.f32 %v1290_v19, %v1109_v34  ;;  %v1303_v39 = vadd.f32 %v1289_v7, %v1110_v35  ;;  %v1758_v35 = vmax.f32 %v1726_v52, 0.0 }
 0x2b8   :  { %v1431_v48 = vrot.slane %v1342_v61, 3 }
 0x2b9   :  { %1182 = vrot.lane.b32.xlu1 %v3105_v63, %s2459_s18  ;;  %1178 = vrot.lane.b32.xlu0 %v2987_v56, %s2459_s18 }
 0x2ba   :  { %v1482_v37 = vsel %vm1457_vm6, %v1431_v48, %v1432_v13  ;;  %v1483_v2 = vsel %vm1457_vm6, %v1430_v4, %v1431_v48  ;;  %v3169_v4 = vld [vmem:[%s3901_s4 + $0x8] sm:$0xff]  ;;  %v3181_v48 = vpop.f32.mrf.mxu1 }
 0x2bb   :  { %v3158_v44 = vpop.permute.xlu1 %1154  ;;  %v1535_v17 = vpop.permute.xlu0 %1534  ;;  %v1495_v10 = vadd.f32 %v1483_v2, %v1302_v50  ;;  %v1496_v62 = vadd.f32 %v1482_v37, %v1303_v39  ;;  %v1789_v34 = vmul.f32 %v3169_v4, %v1755_v59  ;;  %v1791_v18 = vmul.f32 %v3169_v4, %v1757_v1 }
 0x2bc   :  { %v1624_v22 = vrot.slane %v1535_v17, 4  ;;  %v1788_v37 = vmul.f32 %v3186_v55, %v1754_v20  ;;  %v1790_v2 = vmul.f32 %v3186_v55, %v1756_v9  ;;  %v1046_v39 = vrot.slane %v3134_v16, 1 }
 0x2bd   :  { %1375 = vrot.lane.b32.xlu1 %v3105_v63, %s2460_s19  ;;  %1568 = vrot.lane.b32.xlu0 %v3105_v63, %s2457_s2  ;;  %v1822_v52 = vsel %vm1820_vm7, %v1789_v34, -inf  ;;  %v1831_v1 = vsel %vm1820_vm7, %v1791_v18, -inf  ;;  %v1241_v18 = vrot.slane %v3158_v44, 2 }
 0x2be   :  { %v1675_v11 = vsel %vm1650_vm5, %v1624_v22, %v1625_v54  ;;  %v1676_v14 = vsel %vm1650_vm5, %v1623_v47, %v1624_v22  ;;  %v1821_v20 = vsel %vm1820_vm7, %v1788_v37, -inf  ;;  %v1830_v9 = vsel %vm1820_vm7, %v1790_v2, -inf }
 0x2bf   :  { %v1688_v58 = vadd.f32 %v1676_v14, %v1495_v10  ;;  %v1689_v61 = vadd.f32 %v1675_v11, %v1496_v62  ;;  %v3177_v7 = vpop.permute.xlu1 %1347  ;;  %v3179_v19 = vpop.permute.xlu0 %1540  ;;  %v1792_v10 = vmul.f32 %v3186_v55, %v1758_v35 }
 0x2c0   :  { %v1434_v17 = vrot.slane %v3177_v7, 3  ;;  %v3219_v35 = vpop.f32.mrf.mxu1 }
 0x2c1   :  { %v1727_v47 = vadd.f32 %v3123_v5, %v1688_v58  ;;  %985 = vrot.lane.b32.xlu1 %v3181_v48, %s2458_s17  ;;  %1373 = vrot.lane.b32.xlu0 %v3181_v48, %s2460_s19  ;;  %v1839_v37 = vsel %vm1820_vm7, %v1792_v10, -inf  ;;  %v1627_v10 = vrot.slane %v3179_v19, 4 }
 0x2c3   :  { %v1759_v21 = vmax.f32 %v1727_v47, 0.0  ;;  %v958_v24 = vpop.permute.xlu1 %957  ;;  %v1346_v50 = vpop.permute.xlu0 %1345  ;;  %v1823_v47 = vmax.f32 %v1821_v20, %v1822_v52 }
 0x2c4   :  { %v1045_v22 = vrot.slane %v958_v24, 1  ;;  %v1433_v59 = vrot.slane %v1346_v50, 3 }
 0x2c5   :  { %v1793_v62 = vmul.f32 %v3169_v4, %v1759_v21  ;;  %1180 = vrot.lane.b32.xlu1 %v3181_v48, %s2459_s18  ;;  %1566 = vrot.lane.b32.xlu0 %v3181_v48, %s2457_s2 }
 0x2c6   :  { %v1094_v16 = vsel %vm1071_vm0, %v1045_v22, %v1046_v39  ;;  %v1095_v11 = vsel %vm1071_vm0, %v1044_v46, %v1045_v22  ;;  %v1480_v14 = vsel %vm1457_vm6, %v1433_v59, %v1434_v17  ;;  %v1832_v46 = vmax.f32 %v1830_v9, %v1831_v1 }
 0x2c7   :  { %v1153_v58 = vpop.permute.xlu1 %1152  ;;  %v1539_v34 = vpop.permute.xlu0 %1538  ;;  %v1840_v6 = vsel %vm1820_vm7, %v1793_v62, -inf  ;;  %v1111_v24 = vadd.f32 %v2823_v23, %v1095_v11  ;;  %v1112_v50 = vadd.f32 %v1094_v16, %v2857_v26  ;;  %v1728_v23 = vadd.f32 %v3123_v5, %v1689_v61 }
 0x2c8   :  { %v1240_v21 = vrot.slane %v1153_v58, 2  ;;  %v1626_v22 = vrot.slane %v1539_v34, 4  ;;  %v1841_v26 = vmax.f32 %v1839_v37, %v1840_v6  ;;  %v3241_v11 = vpop.f32.mrf.mxu1  ;;  %v1481_v51 = vsel %vm1457_vm6, %v1432_v13, %v1433_v59 }
 0x2c9   :  { %1186 = vrot.lane.b32.xlu1 %v3219_v35, %s2459_s18  ;;  %991 = vrot.lane.b32.xlu0 %v3219_v35, %s2458_s17  ;;  %v1824_v61 = vrot.slane %v1823_v47, 4  ;;  %v1760_v19 = vmax.f32 %v1728_v23, 0.0 }
 0x2ca   :  { %v1287_v2 = vsel %vm1264_vm4, %v1240_v21, %v1241_v18  ;;  %v1288_v44 = vsel %vm1264_vm4, %v1239_v3, %v1240_v21  ;;  %v1833_v3 = vrot.slane %v1832_v46, 4  ;;  %v1673_v58 = vsel %vm1650_vm5, %v1626_v22, %v1627_v10 }
 0x2cb   :  { %v1304_v52 = vadd.f32 %v1288_v44, %v1111_v24  ;;  %v1305_v62 = vadd.f32 %v1287_v2, %v1112_v50  ;;  %v3237_v1 = vpop.permute.xlu1 %1158  ;;  %v3239_v16 = vpop.permute.xlu0 %963  ;;  %v1674_v8 = vsel %vm1650_vm5, %v1625_v54, %v1626_v22  ;;  %v1842_v13 = vrot.slane %v1841_v26, 4 }
 0x2cc   :  { %v1834_v24 = vmax.f32 %v1832_v46, %v1833_v3  ;;  %v1825_v53 = vmax.f32 %v1823_v47, %v1824_v61  ;;  %v1794_v37 = vmul.f32 %v3186_v55, %v1760_v19  ;;  %v1243_v15 = vrot.slane %v3237_v1, 2 }
 0x2cd   :  { %v1497_v20 = vadd.f32 %v1481_v51, %v1304_v52  ;;  %v1498_v9 = vadd.f32 %v1480_v14, %v1305_v62  ;;  %1379 = vrot.lane.b32.xlu1 %v3219_v35, %s2460_s19  ;;  %989 = vrot.lane.b32.xlu0 %v3241_v11, %s2458_s17  ;;  %v1843_v2 = vmax.f32 %v1841_v26, %v1842_v13 }
 0x2ce   :  { %v1835_v52 = vrot.slane %v1834_v24, 2  ;;  %v1848_v3 = vsel %vm1820_vm7, %v1794_v37, -inf }
 0x2cf   :  { %v1690_v59 = vadd.f32 %v1674_v8, %v1497_v20  ;;  %v1691_v34 = vadd.f32 %v1673_v58, %v1498_v9  ;;  %v3258_v14 = vpop.permute.xlu1 %1351  ;;  %v3260_v6 = vpop.permute.xlu0 %961  ;;  %v1844_v51 = vrot.slane %v1843_v2, 2 }
 0x2d0   :  { %v1047_v21 = vrot.slane %v3260_v6, 1  ;;  %v3294_v58 = vpop.f32.mrf.mxu1  ;;  %v1836_v13 = vmax.f32 %v1834_v24, %v1835_v52 }
 0x2d1   :  { %v1729_v50 = vadd.f32 %v3123_v5, %v1690_v59  ;;  %1572 = vrot.lane.b32.xlu1 %v3219_v35, %s2457_s2  ;;  %1184 = vrot.lane.b32.xlu0 %v3241_v11, %s2459_s18  ;;  %v1845_v37 = vmax.f32 %v1843_v2, %v1844_v51 }
 0x2d2   :  { %v1093_v54 = vsel %vm1071_vm0, %v1046_v39, %v1047_v21  ;;  %v1826_v39 = vrot.slane %v1825_v53, 2 }
 0x2d3   :  { %v1761_v44 = vmax.f32 %v1729_v50, 0.0  ;;  %v3273_v22 = vpop.permute.xlu1 %1544  ;;  %v3275_v46 = vpop.permute.xlu0 %1156  ;;  %v1113_v47 = vadd.f32 %v2843_v25, %v1093_v54 }
 0x2d4   :  { %v1242_v23 = vrot.slane %v3275_v46, 2  ;;  %v1827_v54 = vmax.f32 %v1825_v53, %v1826_v39  ;;  %v1846_v39 = vrot.slane %v1845_v37, 1 }
 0x2d5   :  { %v1795_v62 = vmul.f32 %v3169_v4, %v1761_v44  ;;  %1570 = vrot.lane.b32.xlu1 %v3241_v11, %s2457_s2  ;;  %1377 = vrot.lane.b32.xlu0 %v3241_v11, %s2460_s19 }
 0x2d6   :  { %v1286_v26 = vsel %vm1264_vm4, %v1241_v18, %v1242_v23  ;;  %v1730_v18 = vadd.f32 %v3123_v5, %v1691_v34  ;;  %v1828_v2 = vrot.slane %v1827_v54, 1 }
 0x2d7   :  { %v1849_v20 = vsel %vm1820_vm7, %v1795_v62, -inf  ;;  %v1306_v9 = vadd.f32 %v1286_v26, %v1113_v47  ;;  %v3290_v61 = vpop.permute.xlu1 %1542  ;;  %v3292_v25 = vpop.permute.xlu0 %1349  ;;  %v1837_v26 = vrot.slane %v1836_v13, 1 }
 0x2d8   :  { %v1850_v8 = vmax.f32 %v1848_v3, %v1849_v20  ;;  %v1435_v19 = vrot.slane %v3292_v25, 3  ;;  %v1628_v59 = vrot.slane %v3290_v61, 4  ;;  %v1762_v7 = vmax.f32 %v1730_v18, 0.0  ;;  %v3325_v20 = vpop.f32.mrf.mxu1 }
 0x2d9   :  { %995 = vrot.lane.b32.xlu1 %v3294_v58, %s2458_s17  ;;  %1383 = vrot.lane.b32.xlu0 %v3294_v58, %s2460_s19 }
 0x2da   :  { %v1851_v50 = vrot.slane %v1850_v8, 4  ;;  %v1479_v24 = vsel %vm1457_vm6, %v1434_v17, %v1435_v19  ;;  %v1672_v34 = vsel %vm1650_vm5, %v1627_v10, %v1628_v59  ;;  %v1796_v18 = vmul.f32 %v3186_v55, %v1762_v7 }
 0x2db   :  { %v3309_v44 = vpop.permute.xlu1 %967  ;;  %v3311_v52 = vpop.permute.xlu0 %1355  ;;  %v1499_v47 = vadd.f32 %v1479_v24, %v1306_v9 }
 0x2dc   :  { %v1852_v62 = vmax.f32 %v1850_v8, %v1851_v50  ;;  %v1838_v8 = vmax.f32 %v1836_v13, %v1837_v26  ;;  %v1967_v13 = vld [vmem:[%s3902_s5 + $0x10] sm:$0xff]  ;;  %v3341_v26 = vpop.f32.mrf.mxu1 }
 0x2dd   :  { %1190 = vrot.lane.b32.xlu1 %v3294_v58, %s2459_s18  ;;  %1576 = vrot.lane.b32.xlu0 %v3294_v58, %s2457_s2  ;;  %v1692_v53 = vadd.f32 %v1672_v34, %v1499_v47  ;;  %v1048_v47 = vrot.slane %v3239_v16, 1 }
 0x2de   :  { %v1853_v17 = vrot.slane %v1852_v62, 2  ;;  %2410 = vmatprep.subr.mxu1 %v1967_v13 }
 0x2df   :  { %v3321_v51 = vpop.permute.xlu1 %1162  ;;  %v3323_v3 = vpop.permute.xlu0 %1548  ;;  %v1731_v10 = vadd.f32 %v3123_v5, %v1692_v53  ;;  %2411 = vmatpush3.msra.mxu1 %v1967_v13 }
 0x2e0   :  { %v1854_v9 = vmax.f32 %v1852_v62, %v1853_v17  ;;  %v1829_v62 = vmax.f32 %v1827_v54, %v1828_v2  ;;  %v1847_v17 = vmax.f32 %v1845_v37, %v1846_v39  ;;  %v1092_v54 = vsel %vm1071_vm0, %v1047_v21, %v1048_v47 }
 0x2e1   :  { %993 = vrot.lane.b32.xlu1 %v3325_v20, %s2458_s17  ;;  %1188 = vrot.lane.b32.xlu0 %v3325_v20, %s2459_s18  ;;  %v1763_v50 = vmax.f32 %v1731_v10, 0.0  ;;  %v1857_v2 = vsel %vm1820_vm7, %v1796_v18, -inf  ;;  %v1436_v39 = vrot.slane %v3258_v14, 3  ;;  %v1285_v21 = vsel %vm1264_vm4, %v1242_v23, %v1243_v15 }
 0x2e2   :  { %v1855_v24 = vrot.slane %v1854_v9, 1  ;;  %v1992_v37 = vsel %vm1991_vm8, %v1838_v8, %v1829_v62  ;;  %v1114_v18 = vadd.f32 %v1092_v54, %v2873_v28 }
 0x2e3   :  { %v3334_v34 = vpop.permute.xlu1 %965  ;;  %v3336_v12 = vpop.permute.xlu0 %1160  ;;  %v1797_v7 = vmul.f32 %v3169_v4, %v1763_v50  ;;  %v1994_v14 = vsel %vm1993_vm9, %v1847_v17, %v1992_v37 }
 0x2e4   :  { %v1049_v53 = vrot.slane %v3334_v34, 1  ;;  %v1244_v10 = vrot.slane %v3336_v12, 2  ;;  %v1856_v16 = vmax.f32 %v1854_v9, %v1855_v24  ;;  %v1307_v28 = vadd.f32 %v1285_v21, %v1114_v18 }
 0x2e5   :  { %999 = vrot.lane.b32.xlu1 %v3341_v26, %s2458_s17  ;;  %1381 = vrot.lane.b32.xlu0 %v3325_v20, %s2460_s19  ;;  %v1858_v1 = vsel %vm1820_vm7, %v1797_v7, -inf  ;;  %v1629_v7 = vrot.slane %v3273_v22, 4 }
 0x2e6   :  { %v1091_v6 = vsel %vm1071_vm0, %v1048_v47, %v1049_v53  ;;  %v1859_v9 = vmax.f32 %v1857_v2, %v1858_v1  ;;  %v1284_v47 = vsel %vm1264_vm4, %v1243_v15, %v1244_v10  ;;  %v1996_v23 = vsel %vm1995_vm10, %v1856_v16, %v1994_v14 }
 0x2e7   :  { %v1115_v50 = vadd.f32 %v2867_v27, %v1091_v6  ;;  %v3366_v8 = vpop.permute.xlu1 %1357  ;;  %v3368_v24 = vpop.permute.xlu0 %1353  ;;  %v1478_v27 = vsel %vm1457_vm6, %v1435_v19, %v1436_v39  ;;  %v1671_v1 = vsel %vm1650_vm5, %v1628_v59, %v1629_v7  ;;  %v1050_v14 = vrot.slane %v3309_v44, 1 }
 0x2e8   :  { %v1437_v46 = vrot.slane %v3368_v24, 3  ;;  %v1860_v34 = vrot.slane %v1859_v9, 4  ;;  %v3394_v19 = vpop.f32.mrf.mxu1  ;;  %v1500_v16 = vadd.f32 %v1478_v27, %v1307_v28 }
 0x2e9   :  { %v1308_v62 = vadd.f32 %v1284_v47, %v1115_v50  ;;  %1194 = vrot.lane.b32.xlu1 %v3341_v26, %s2459_s18  ;;  %1574 = vrot.lane.b32.xlu0 %v3325_v20, %s2457_s2  ;;  %v1090_v59 = vsel %vm1071_vm0, %v1049_v53, %v1050_v14 }
 0x2ea   :  { %v1477_v15 = vsel %vm1457_vm6, %v1436_v39, %v1437_v46  ;;  %v1861_v17 = vmax.f32 %v1859_v9, %v1860_v34  ;;  %v1693_v50 = vadd.f32 %v1671_v1, %v1500_v16 }
 0x2eb   :  { %v3390_v13 = vpop.permute.xlu1 %1550  ;;  %v3392_v25 = vpop.permute.xlu0 %1546  ;;  %v1501_v37 = vadd.f32 %v1477_v15, %v1308_v62  ;;  %v1966_v15 = vld [vmem:[%s3902_s5 + $0x8] sm:$0xff] }
 0x2ec   :  { %v1630_v54 = vrot.slane %v3392_v25, 4  ;;  %v1862_v2 = vrot.slane %v1861_v17, 2  ;;  %v3426_v62 = vpop.f32.mrf.mxu1  ;;  %v1732_v28 = vadd.f32 %v3123_v5, %v1693_v50  ;;  %2412 = vmatprep.subr.mxu1 %v1966_v15 }
 0x2ed   :  { %1387 = vrot.lane.b32.xlu1 %v3341_v26, %s2460_s19  ;;  %997 = vrot.lane.b32.xlu0 %v3394_v19, %s2458_s17 }
 0x2ee   :  { %v1670_v39 = vsel %vm1650_vm5, %v1629_v7, %v1630_v54  ;;  %v1863_v9 = vmax.f32 %v1861_v17, %v1862_v2  ;;  %v1116_v7 = vadd.f32 %v1090_v59, %v2893_v30  ;;  %2413 = vmatpush3.msra.mxu1 %v1966_v15 }
 0x2ef   :  { %v1694_v22 = vadd.f32 %v1670_v39, %v1501_v37  ;;  %v3408_v6 = vpop.permute.xlu1 %973  ;;  %v3410_v21 = vpop.permute.xlu0 %971  ;;  %v1245_v37 = vrot.slane %v3321_v51, 2 }
 0x2f0   :  { %v1864_v18 = vrot.slane %v1863_v9, 1  ;;  %v1053_v17 = vrot.slane %v3408_v6, 1  ;;  %v1052_v25 = vrot.slane %v3410_v21, 1  ;;  %v3449_v21 = vpop.f32.mrf.mxu1 }
 0x2f1   :  { %1580 = vrot.lane.b32.xlu1 %v3341_v26, %s2457_s2  ;;  %1192 = vrot.lane.b32.xlu0 %v3394_v19, %s2459_s18  ;;  %v1733_v61 = vadd.f32 %v3123_v5, %v1694_v22  ;;  %v1283_v30 = vsel %vm1264_vm4, %v1244_v10, %v1245_v37  ;;  %v1631_v10 = vrot.slane %v3323_v3, 4 }
 0x2f2   :  { %v1865_v34 = vmax.f32 %v1863_v9, %v1864_v18  ;;  %v1764_v9 = vmax.f32 %v1732_v28, 0.0  ;;  %v1087_v51 = vsel %vm1071_vm0, %v1052_v25, %v1053_v17 }
 0x2f3   :  { %v3422_v47 = vpop.permute.xlu1 %1168  ;;  %v3424_v27 = vpop.permute.xlu0 %1166  ;;  %v1765_v16 = vmax.f32 %v1733_v61, 0.0  ;;  %v1119_v15 = vadd.f32 %v2899_v31, %v1087_v51  ;;  %v1669_v24 = vsel %vm1650_vm5, %v1630_v54, %v1631_v10 }
 0x2f4   :  { %v3439_v53 = vsel %vm1997_vm11, %v1865_v34, %v1996_v23  ;;  %v1248_v2 = vrot.slane %v3422_v47, 2  ;;  %v1247_v39 = vrot.slane %v3424_v27, 2  ;;  %v1438_v23 = vrot.slane %v3311_v52, 3 }
 0x2f5   :  { %1385 = vrot.lane.b32.xlu1 %v3394_v19, %s2460_s19  ;;  %1003 = vrot.lane.b32.xlu0 %v3426_v62, %s2458_s17  ;;  %v1309_v52 = vadd.f32 %v1283_v30, %v1116_v7  ;;  %v1799_v12 = vmul.f32 %v3169_v4, %v1765_v16  ;;  %v1798_v28 = vmul.f32 %v3186_v55, %v1764_v9 }
 0x2f6   :  { %v1476_v61 = vsel %vm1457_vm6, %v1437_v46, %v1438_v23  ;;  %v1280_v59 = vsel %vm1264_vm4, %v1247_v39, %v1248_v2 }
 0x2f7   :  { %v3445_v1 = vpop.permute.xlu1 %1361  ;;  %v3447_v22 = vpop.permute.xlu0 %1359  ;;  %v1502_v16 = vadd.f32 %v1476_v61, %v1309_v52  ;;  %v1867_v31 = vsel %vm1820_vm7, %v1799_v12, -inf  ;;  %v1866_v51 = vsel %vm1820_vm7, %v1798_v28, -inf }
 0x2f8   :  { %v3909_v50 = vrot.slane %v3445_v1, 3  ;;  %v1440_v18 = vrot.slane %v3447_v22, 3  ;;  %v1312_v22 = vadd.f32 %v1280_v59, %v1119_v15  ;;  %v1439_v59 = vrot.slane %v3366_v8, 3 }
 0x2f9   :  { %1578 = vrot.lane.b32.xlu1 %v3394_v19, %s2457_s2  ;;  %1001 = vrot.lane.b32.xlu0 %v3449_v21, %s2458_s17 }
 0x2fa   :  { %v1473_v46 = vsel %vm1457_vm6, %v1440_v18, %v3909_v50  ;;  %v1868_v50 = vmax.f32 %v1866_v51, %v1867_v31 }
 0x2fb   :  { %v3476_v27 = vpop.permute.xlu1 %1554  ;;  %v1553_v34 = vpop.permute.xlu0 %1552  ;;  %v1505_v0 = vadd.f32 %v1473_v46, %v1312_v22 }
 0x2fc   :  { %v1634_v7 = vrot.slane %v3476_v27, 4  ;;  %v1633_v3 = vrot.slane %v1553_v34, 4  ;;  %v1695_v34 = vadd.f32 %v1669_v24, %v1502_v16  ;;  %v1632_v16 = vrot.slane %v3390_v13, 4 }
 0x2fd   :  { %1198 = vrot.lane.b32.xlu1 %v3426_v62, %s2459_s18  ;;  %1196 = vrot.lane.b32.xlu0 %v3449_v21, %s2459_s18  ;;  %v1869_v31 = vrot.slane %v1868_v50, 4  ;;  %v1475_v13 = vsel %vm1457_vm6, %v1438_v23, %v1439_v59 }
 0x2fe   :  { %v1666_v54 = vsel %vm1650_vm5, %v1633_v3, %v1634_v7  ;;  %v1734_v24 = vadd.f32 %v3123_v5, %v1695_v34  ;;  %v1667_v23 = vsel %vm1650_vm5, %v1632_v16, %v1633_v3 }
 0x2ff   :  { %v3496_v9 = vpop.permute.xlu1 %977  ;;  %v970_v30 = vpop.permute.xlu0 %969  ;;  %v1698_v52 = vadd.f32 %v1666_v54, %v1505_v0 }
 0x300   :  { %v1051_v60 = vrot.slane %v970_v30, 1  ;;  %v1766_v54 = vmax.f32 %v1734_v24, 0.0  ;;  %v1474_v30 = vsel %vm1457_vm6, %v1439_v59, %v1440_v18  ;;  %v1055_v51 = vrot.slane %v3496_v9, 1 }
 0x301   :  { %1391 = vrot.lane.b32.xlu1 %v3426_v62, %s2460_s19  ;;  %1389 = vrot.lane.b32.xlu0 %v3449_v21, %s2460_s19 }
 0x302   :  { %v1088_v12 = vsel %vm1071_vm0, %v1051_v60, %v1052_v25  ;;  %v1089_v61 = vsel %vm1071_vm0, %v1050_v14, %v1051_v60  ;;  %v1737_v60 = vadd.f32 %v3123_v5, %v1698_v52  ;;  %v1870_v52 = vmax.f32 %v1868_v50, %v1869_v31  ;;  %v1965_v31 = vld [vmem:[%s3902_s5] sm:$0xff] }
 0x303   :  { %v3510_v28 = vpop.permute.xlu1 %1172  ;;  %v1165_v15 = vpop.permute.xlu0 %1164  ;;  %v1117_v0 = vadd.f32 %v2887_v29, %v1089_v61  ;;  %v1118_v25 = vadd.f32 %v1088_v12, %v2905_v32  ;;  %2414 = vmatprep.subr.mxu1 %v1965_v31 }
 0x304   :  { %v1246_v46 = vrot.slane %v1165_v15, 2  ;;  %v1769_v61 = vmax.f32 %v1737_v60, 0.0  ;;  %v1250_v3 = vrot.slane %v3510_v28, 2  ;;  %2415 = vmatpush3.msra.mxu1 %v1965_v31 }
 0x305   :  { %1584 = vrot.lane.b32.xlu1 %v3426_v62, %s2457_s2  ;;  %1582 = vrot.lane.b32.xlu0 %v3449_v21, %s2457_s2 }
 0x306   :  { %v1281_v44 = vsel %vm1264_vm4, %v1246_v46, %v1247_v39  ;;  %v1282_v8 = vsel %vm1264_vm4, %v1245_v37, %v1246_v46  ;;  %v1668_v39 = vsel %vm1650_vm5, %v1631_v10, %v1632_v16  ;;  %v1800_v46 = vmul.f32 %v3186_v55, %v1766_v54 }
 0x307   :  { %v1310_v29 = vadd.f32 %v1282_v8, %v1117_v0  ;;  %v1311_v14 = vadd.f32 %v1281_v44, %v1118_v25  ;;  %v3527_v32 = vpop.permute.xlu1 %1365  ;;  %v976_v22 = vpop.permute.xlu0 %975  ;;  %v1803_v60 = vmul.f32 %v3169_v4, %v1769_v61 }
 0x308   :  { %v1054_v34 = vrot.slane %v976_v22, 1 }
 0x309   :  { %v1503_v37 = vadd.f32 %v1475_v13, %v1310_v29  ;;  %v1504_v12 = vadd.f32 %v1474_v30, %v1311_v14  ;;  %v1871_v13 = vrot.slane %v1870_v52, 2  ;;  %v1443_v30 = vrot.slane %v3527_v32, 3 }
 0x30a   :  { %v1085_v15 = vsel %vm1071_vm0, %v1054_v34, %v1055_v51  ;;  %v1086_v18 = vsel %vm1071_vm0, %v1053_v17, %v1054_v34 }
 0x30b   :  { %v1696_v59 = vadd.f32 %v1668_v39, %v1503_v37  ;;  %v1697_v24 = vadd.f32 %v1667_v23, %v1504_v12  ;;  %v3544_v10 = vpop.permute.xlu1 %1558  ;;  %v1171_v50 = vpop.permute.xlu0 %1170  ;;  %v1120_v17 = vadd.f32 %v1086_v18, %v2921_v36  ;;  %v1121_v25 = vadd.f32 %v2911_v33, %v1085_v15 }
 0x30c   :  { %v1249_v16 = vrot.slane %v1171_v50, 2  ;;  %v1875_v39 = vsel %vm1820_vm7, %v1800_v46, -inf  ;;  %v3910_v23 = vrot.slane %v3445_v1, 3  ;;  %v1872_v15 = vmax.f32 %v1870_v52, %v1871_v13 }
 0x30d   :  { %v1735_v0 = vadd.f32 %v3123_v5, %v1696_v59  ;;  %v1736_v6 = vadd.f32 %v3123_v5, %v1697_v24  ;;  %v1636_v31 = vrot.slane %v3544_v10, 4 }
 0x30e   :  { %v1278_v44 = vsel %vm1264_vm4, %v1249_v16, %v1250_v3  ;;  %v1279_v8 = vsel %vm1264_vm4, %v1248_v2, %v1249_v16  ;;  %v1885_v2 = vsel %vm1820_vm7, %v1803_v60, -inf }
 0x30f   :  { %v1767_v29 = vmax.f32 %v1735_v0, 0.0  ;;  %v1768_v14 = vmax.f32 %v1736_v6, 0.0  ;;  %v1313_v36 = vadd.f32 %v1279_v8, %v1120_v17  ;;  %v1314_v22 = vadd.f32 %v1278_v44, %v1121_v25  ;;  %v3564_v33 = vpop.permute.xlu1 %1371  ;;  %v1364_v54 = vpop.permute.xlu0 %1363 }
 0x310   :  { %v1442_v34 = vrot.slane %v1364_v54, 3 }
 0x311   :  { %v1801_v37 = vmul.f32 %v3169_v4, %v1767_v29  ;;  %v1802_v47 = vmul.f32 %v3186_v55, %v1768_v14  ;;  %v1873_v14 = vrot.slane %v1872_v15, 1 }
 0x312   :  { %v1471_v12 = vsel %vm1457_vm6, %v1442_v34, %v1443_v30  ;;  %v1472_v61 = vsel %vm1457_vm6, %v3910_v23, %v1442_v34 }
 0x313   :  { %v1876_v18 = vsel %vm1820_vm7, %v1801_v37, -inf  ;;  %v1506_v59 = vadd.f32 %v1472_v61, %v1313_v36  ;;  %v1507_v24 = vadd.f32 %v1471_v12, %v1314_v22  ;;  %v3580_v50 = vpop.permute.xlu1 %1564  ;;  %v1557_v46 = vpop.permute.xlu0 %1556  ;;  %v1884_v16 = vsel %vm1820_vm7, %v1802_v47, -inf }
 0x314   :  { %v1635_v0 = vrot.slane %v1557_v46, 4  ;;  %v1877_v6 = vmax.f32 %v1875_v39, %v1876_v18  ;;  %v1886_v17 = vmax.f32 %v1884_v16, %v1885_v2  ;;  %v1446_v12 = vrot.slane %v3564_v33, 3 }
 0x316   :  { %v1664_v1 = vsel %vm1650_vm5, %v1635_v0, %v1636_v31  ;;  %v1665_v52 = vsel %vm1650_vm5, %v1634_v7, %v1635_v0  ;;  %v1878_v25 = vrot.slane %v1877_v6, 4  ;;  %v1887_v60 = vrot.slane %v1886_v17, 4 }
 0x317   :  { %v1699_v44 = vadd.f32 %v1665_v52, %v1506_v59  ;;  %v1700_v8 = vadd.f32 %v1664_v1, %v1507_v24  ;;  %v3592_v13 = vpop.permute.xlu1 %981  ;;  %v980_v29 = vpop.permute.xlu0 %979  ;;  %v1874_v24 = vmax.f32 %v1872_v15, %v1873_v14 }
 0x318   :  { %v1057_v36 = vrot.slane %v3592_v13, 1  ;;  %v1056_v22 = vrot.slane %v980_v29, 1  ;;  %v1879_v54 = vmax.f32 %v1877_v6, %v1878_v25  ;;  %v1888_v34 = vmax.f32 %v1886_v17, %v1887_v60 }
 0x319   :  { %v1738_v39 = vadd.f32 %v3123_v5, %v1699_v44  ;;  %v1739_v27 = vadd.f32 %v3123_v5, %v1700_v8 }
 0x31a   :  { %v1083_v7 = vsel %vm1071_vm0, %v1056_v22, %v1057_v36  ;;  %v1084_v37 = vsel %vm1071_vm0, %v1055_v51, %v1056_v22  ;;  %v1880_v47 = vrot.slane %v1879_v54, 2  ;;  %v1889_v2 = vrot.slane %v1888_v34, 2 }
 0x31b   :  { %v1770_v23 = vmax.f32 %v1738_v39, 0.0  ;;  %v1771_v61 = vmax.f32 %v1739_v27, 0.0  ;;  %v3606_v18 = vpop.permute.xlu1 %1176  ;;  %v1175_v59 = vpop.permute.xlu0 %1174  ;;  %v1122_v51 = vadd.f32 %v1084_v37, %v2957_v49  ;;  %v1123_v1 = vadd.f32 %v2947_v45, %v1083_v7 }
 0x31c   :  { %v1252_v46 = vrot.slane %v3606_v18, 2  ;;  %v1251_v16 = vrot.slane %v1175_v59, 2  ;;  %v1881_v0 = vmax.f32 %v1879_v54, %v1880_v47  ;;  %v1890_v6 = vmax.f32 %v1888_v34, %v1889_v2 }
 0x31d   :  { %v1804_v9 = vmul.f32 %v3186_v55, %v1770_v23  ;;  %v1805_v17 = vmul.f32 %v3169_v4, %v1771_v61  ;;  %v2000_v37 = vsel %vm1999_vm12, %v1874_v24, %v3439_v53  ;;  %v1639_v59 = vrot.slane %v3580_v50, 4 }
 0x31e   :  { %v1276_v52 = vsel %vm1264_vm4, %v1251_v16, %v1252_v46  ;;  %v1277_v15 = vsel %vm1264_vm4, %v1250_v3, %v1251_v16  ;;  %v1882_v25 = vrot.slane %v1881_v0, 1  ;;  %v1891_v60 = vrot.slane %v1890_v6, 1 }
 0x31f   :  { %v1893_v44 = vsel %vm1820_vm7, %v1804_v9, -inf  ;;  %v1894_v8 = vsel %vm1820_vm7, %v1805_v17, -inf  ;;  %v1315_v29 = vadd.f32 %v1277_v15, %v1122_v51  ;;  %v1316_v14 = vadd.f32 %v1276_v52, %v1123_v1  ;;  %v1370_v22 = vpop.permute.xlu1 %1369  ;;  %v1368_v49 = vpop.permute.xlu0 %1367 }
 0x320   :  { %v1895_v54 = vmax.f32 %v1893_v44, %v1894_v8  ;;  %v1445_v45 = vrot.slane %v1370_v22, 3  ;;  %v1444_v34 = vrot.slane %v1368_v49, 3  ;;  %v1883_v39 = vmax.f32 %v1881_v0, %v1882_v25 }
 0x321   :  { %v1892_v27 = vmax.f32 %v1890_v6, %v1891_v60 }
 0x322   :  { %v1468_v28 = vsel %vm1457_vm6, %v1445_v45, %v1446_v12  ;;  %v1469_v3 = vsel %vm1457_vm6, %v1444_v34, %v1445_v45  ;;  %v1470_v7 = vsel %vm1457_vm6, %v1443_v30, %v1444_v34  ;;  %v2002_v18 = vsel %vm2001_vm13, %v1883_v39, %v2000_v37 }
 0x323   :  { %v1508_v47 = vadd.f32 %v1470_v7, %v1315_v29  ;;  %v1509_v2 = vadd.f32 %v1469_v3, %v1316_v14  ;;  %v1563_v23 = vpop.permute.xlu1 %1562  ;;  %v1561_v61 = vpop.permute.xlu0 %1560  ;;  %v2004_v6 = vsel %vm2003_vm14, %v1892_v27, %v2002_v18  ;;  %v1896_v24 = vrot.slane %v1895_v54, 4 }
 0x324   :  { %v1638_v16 = vrot.slane %v1563_v23, 4  ;;  %v1637_v0 = vrot.slane %v1561_v61, 4  ;;  %2416 = vmatprep.mubr.msk.f32.mxu1 %vm1820_vm7, %v2004_v6 }
 0x325   :  { %v1897_v10 = vmax.f32 %v1895_v54, %v1896_v24 }
 0x326   :  { %v1661_v32 = vsel %vm1650_vm5, %v1638_v16, %v1639_v59  ;;  %v1662_v53 = vsel %vm1650_vm5, %v1637_v0, %v1638_v16  ;;  %v1663_v30 = vsel %vm1650_vm5, %v1636_v31, %v1637_v0 }
 0x327   :  { %v1701_v9 = vadd.f32 %v1663_v30, %v1508_v47  ;;  %v1702_v17 = vadd.f32 %v1662_v53, %v1509_v2  ;;  %v3647_v51 = vpop.permute.xlu1 %987  ;;  %v984_v1 = vpop.permute.xlu0 %983  ;;  %v1898_v13 = vrot.slane %v1897_v10, 2 }
 0x328   :  { %v1058_v52 = vrot.slane %v984_v1, 1 }
 0x329   :  { %v1740_v15 = vadd.f32 %v3123_v5, %v1701_v9  ;;  %v1741_v25 = vadd.f32 %v3123_v5, %v1702_v17  ;;  %v1899_v2 = vmax.f32 %v1897_v10, %v1898_v13 }
 0x32a   :  { %v1082_v60 = vsel %vm1071_vm0, %v1057_v36, %v1058_v52 }
 0x32b   :  { %v1772_v44 = vmax.f32 %v1740_v15, 0.0  ;;  %v1773_v8 = vmax.f32 %v1741_v25, 0.0  ;;  %v3655_v31 = vpop.permute.xlu1 %1182  ;;  %v1179_v29 = vpop.permute.xlu0 %1178  ;;  %v1124_v45 = vadd.f32 %v1082_v60, %v3010_v43  ;;  %v1900_v30 = vrot.slane %v1899_v2, 1 }
 0x32c   :  { %v1253_v14 = vrot.slane %v1179_v29, 2  ;;  %v1255_v17 = vrot.slane %v3655_v31, 2 }
 0x32d   :  { %v1806_v22 = vmul.f32 %v3186_v55, %v1772_v44  ;;  %v1807_v49 = vmul.f32 %v3169_v4, %v1773_v8  ;;  %v1901_v8 = vmax.f32 %v1899_v2, %v1900_v30 }
 0x32e   :  { %v1275_v34 = vsel %vm1264_vm4, %v1252_v46, %v1253_v14  ;;  %v1060_v46 = vrot.slane %v3647_v51, 1 }
 0x32f   :  { %v1902_v39 = vsel %vm1820_vm7, %v1806_v22, -inf  ;;  %v1903_v36 = vsel %vm1820_vm7, %v1807_v49, -inf  ;;  %v1317_v54 = vadd.f32 %v1275_v34, %v1124_v45  ;;  %v3664_v27 = vpop.permute.xlu1 %1375  ;;  %v3666_v3 = vpop.permute.xlu0 %1568 }
 0x330   :  { %v1904_v7 = vmax.f32 %v1902_v39, %v1903_v36  ;;  %v1448_v15 = vrot.slane %v3664_v27, 3 }
 0x331   :  { %v1510_v37 = vadd.f32 %v1468_v28, %v1317_v54 }
 0x332   :  { %v1905_v47 = vrot.slane %v1904_v7, 4 }
 0x333   :  { %v1703_v23 = vadd.f32 %v1661_v32, %v1510_v37  ;;  %v986_v61 = vpop.permute.xlu1 %985  ;;  %v1374_v43 = vpop.permute.xlu0 %1373 }
 0x334   :  { %v1906_v18 = vmax.f32 %v1904_v7, %v1905_v47  ;;  %v1059_v16 = vrot.slane %v986_v61, 1  ;;  %v1447_v32 = vrot.slane %v1374_v43, 3  ;;  %v3707_v47 = vld [vmem:[%s3900_s3] ss:$0 sm:$0xff] }
 0x335   :  { %v1742_v29 = vadd.f32 %v3123_v5, %v1703_v23 }
 0x336   :  { %v1907_v0 = vrot.slane %v1906_v18, 2  ;;  %v1080_v6 = vsel %vm1071_vm0, %v1059_v16, %v1060_v46  ;;  %v1081_v53 = vsel %vm1071_vm0, %v1058_v52, %v1059_v16  ;;  %v1466_v34 = vsel %vm1457_vm6, %v1447_v32, %v1448_v15 }
 0x337   :  { %v1181_v24 = vpop.permute.xlu1 %1180  ;;  %v1567_v9 = vpop.permute.xlu0 %1566  ;;  %v1125_v51 = vadd.f32 %v2987_v56, %v1081_v53  ;;  %v1126_v25 = vadd.f32 %v1080_v6, %v3181_v48  ;;  %v1641_v48 = vrot.slane %v3666_v3, 4  ;;  %v1774_v27 = vmax.f32 %v1742_v29, 0.0 }
 0x338   :  { %v1908_v28 = vmax.f32 %v1906_v18, %v1907_v0  ;;  %v1254_v1 = vrot.slane %v1181_v24, 2  ;;  %v1640_v44 = vrot.slane %v1567_v9, 4 }
 0x339   :  { %v1808_v23 = vmul.f32 %v3186_v55, %v1774_v27 }
 0x33a   :  { %v1909_v60 = vrot.slane %v1908_v28, 1  ;;  %v1273_v10 = vsel %vm1264_vm4, %v1254_v1, %v1255_v17  ;;  %v1274_v52 = vsel %vm1264_vm4, %v1253_v14, %v1254_v1  ;;  %v1467_v14 = vsel %vm1457_vm6, %v1446_v12, %v1447_v32 }
 0x33b   :  { %v1318_v31 = vadd.f32 %v1274_v52, %v1125_v51  ;;  %v1319_v22 = vadd.f32 %v1273_v10, %v1126_v25  ;;  %v3682_v49 = vpop.permute.xlu1 %1186  ;;  %v3684_v45 = vpop.permute.xlu0 %991  ;;  %v1659_v36 = vsel %vm1650_vm5, %v1640_v44, %v1641_v48  ;;  %v1660_v54 = vsel %vm1650_vm5, %v1639_v59, %v1640_v44 }
 0x33c   :  { %v1910_v56 = vmax.f32 %v1908_v28, %v1909_v60  ;;  %v1911_v53 = vsel %vm1820_vm7, %v1808_v23, -inf }
 0x33d   :  { %v1511_v13 = vadd.f32 %v1467_v14, %v1318_v31  ;;  %v1512_v39 = vadd.f32 %v1466_v34, %v1319_v22 }
 0x33e   :  { %v3694_v5 = vsel %vm1991_vm8, %v1910_v56, %v1901_v8 }
 0x33f   :  { %v1704_v3 = vadd.f32 %v1660_v54, %v1511_v13  ;;  %v1705_v7 = vadd.f32 %v1659_v36, %v1512_v39  ;;  %v3702_v33 = vpop.permute.xlu1 %1379  ;;  %v990_v37 = vpop.permute.xlu0 %989  ;;  %v1062_v39 = vrot.slane %v3684_v45, 1 }
 0x340   :  { %v1061_v12 = vrot.slane %v990_v37, 1 }
 0x341   :  { %v1743_v2 = vadd.f32 %v3707_v47, %v1704_v3  ;;  %v1744_v51 = vadd.f32 %v3707_v47, %v1705_v7 }
 0x342   :  { %v1079_v50 = vsel %vm1071_vm0, %v1060_v46, %v1061_v12 }
 0x343   :  { %v1775_v59 = vmax.f32 %v1743_v2, 0.0  ;;  %v3713_v61 = vpop.permute.xlu1 %1572  ;;  %v1185_v43 = vpop.permute.xlu0 %1184  ;;  %v1127_v0 = vadd.f32 %v3105_v63, %v1079_v50  ;;  %v1776_v44 = vmax.f32 %v1744_v51, 0.0  ;;  %v1257_v2 = vrot.slane %v3682_v49, 2 }
 0x344   :  { %v1256_v18 = vrot.slane %v1185_v43, 2 }
 0x345   :  { %v1809_v16 = vmul.f32 %v3169_v4, %v1775_v59  ;;  %v1810_v34 = vmul.f32 %v3186_v55, %v1776_v44  ;;  %v1078_v55 = vsel %vm1071_vm0, %v1061_v12, %v1062_v39 }
 0x346   :  { %v1272_v6 = vsel %vm1264_vm4, %v1255_v17, %v1256_v18  ;;  %v1271_v12 = vsel %vm1264_vm4, %v1256_v18, %v1257_v2 }
 0x347   :  { %v1912_v30 = vsel %vm1820_vm7, %v1809_v16, -inf  ;;  %v1320_v24 = vadd.f32 %v1272_v6, %v1127_v0  ;;  %v3721_v46 = vpop.permute.xlu1 %1570  ;;  %v1378_v9 = vpop.permute.xlu0 %1377  ;;  %v1920_v45 = vsel %vm1820_vm7, %v1810_v34, -inf }
 0x348   :  { %v1913_v28 = vmax.f32 %v1911_v53, %v1912_v30  ;;  %v1449_v32 = vrot.slane %v1378_v9, 3  ;;  %v1642_v1 = vrot.slane %v3721_v46, 4  ;;  %v1450_v53 = vrot.slane %v3702_v33, 3 }
 0x349   :  { %v1128_v9 = vadd.f32 %v1078_v55, %v3241_v11 }
 0x34a   :  { %v1914_v4 = vrot.slane %v1913_v28, 4  ;;  %v1465_v63 = vsel %vm1457_vm6, %v1448_v15, %v1449_v32  ;;  %v1658_v52 = vsel %vm1650_vm5, %v1641_v48, %v1642_v1  ;;  %v3745_v48 = vld [vmem:[%s3901_s4 + $0x8] sm:$0xff] }
 0x34b   :  { %v3727_v25 = vpop.permute.xlu1 %995  ;;  %v3729_v17 = vpop.permute.xlu0 %1383  ;;  %v1513_v10 = vadd.f32 %v1465_v63, %v1320_v24 }
 0x34c   :  { %v1915_v60 = vmax.f32 %v1913_v28, %v1914_v4  ;;  %v1064_v7 = vrot.slane %v3727_v25, 1  ;;  %v1464_v4 = vsel %vm1457_vm6, %v1449_v32, %v1450_v53  ;;  %v1321_v25 = vadd.f32 %v1271_v12, %v1128_v9 }
 0x34d   :  { %v1706_v29 = vadd.f32 %v1658_v52, %v1513_v10  ;;  %v1643_v10 = vrot.slane %v3713_v61, 4 }
 0x34e   :  { %v1916_v8 = vrot.slane %v1915_v60, 2  ;;  %v1514_v32 = vadd.f32 %v1464_v4, %v1321_v25 }
 0x34f   :  { %v3735_v31 = vpop.permute.xlu1 %1190  ;;  %v3737_v22 = vpop.permute.xlu0 %1576  ;;  %v1745_v15 = vadd.f32 %v3707_v47, %v1706_v29 }
 0x350   :  { %v1917_v56 = vmax.f32 %v1915_v60, %v1916_v8  ;;  %v1259_v33 = vrot.slane %v3735_v31, 2  ;;  %v1645_v31 = vrot.slane %v3737_v22, 4 }
 0x351   :  { %v1777_v13 = vmax.f32 %v1745_v15, 0.0 }
 0x352   :  { %v1918_v14 = vrot.slane %v1917_v56, 1 }
 0x353   :  { %v994_v36 = vpop.permute.xlu1 %993  ;;  %v1189_v54 = vpop.permute.xlu0 %1188  ;;  %v1811_v3 = vmul.f32 %v3745_v48, %v1777_v13  ;;  %v1657_v13 = vsel %vm1650_vm5, %v1642_v1, %v1643_v10 }
 0x354   :  { %v1919_v27 = vmax.f32 %v1917_v56, %v1918_v14  ;;  %v1063_v37 = vrot.slane %v994_v36, 1  ;;  %v1258_v50 = vrot.slane %v1189_v54, 2  ;;  %v1707_v36 = vadd.f32 %v1657_v13, %v1514_v32 }
 0x355   :  { %v1921_v23 = vsel %vm1820_vm7, %v1811_v3, -inf }
 0x356   :  { %v1076_v59 = vsel %vm1071_vm0, %v1063_v37, %v1064_v7  ;;  %v1077_v43 = vsel %vm1071_vm0, %v1062_v39, %v1063_v37  ;;  %v1922_v16 = vmax.f32 %v1920_v45, %v1921_v23  ;;  %v2006_v24 = vsel %vm1993_vm9, %v1919_v27, %v3694_v5 }
 0x357   :  { %v1129_v0 = vadd.f32 %v3219_v35, %v1077_v43  ;;  %v3759_v6 = vpop.permute.xlu1 %999  ;;  %v1382_v49 = vpop.permute.xlu0 %1381  ;;  %v1130_v51 = vadd.f32 %v1076_v59, %v3325_v20  ;;  %v1270_v35 = vsel %vm1264_vm4, %v1257_v2, %v1258_v50  ;;  %v1452_v20 = vrot.slane %v3729_v17, 3 }
 0x358   :  { %v1451_v30 = vrot.slane %v1382_v49, 3  ;;  %v1923_v28 = vrot.slane %v1922_v16, 4  ;;  %v1269_v52 = vsel %vm1264_vm4, %v1258_v50, %v1259_v33  ;;  %v1746_v46 = vadd.f32 %v3707_v47, %v1707_v36 }
 0x359   :  { %v1322_v63 = vadd.f32 %v1270_v35, %v1129_v0  ;;  %v1323_v29 = vadd.f32 %v1269_v52, %v1130_v51  ;;  %v1066_v43 = vrot.slane %v3759_v6, 1 }
 0x35a   :  { %v1924_v18 = vmax.f32 %v1922_v16, %v1923_v28  ;;  %v1463_v60 = vsel %vm1457_vm6, %v1450_v53, %v1451_v30  ;;  %v1462_v56 = vsel %vm1457_vm6, %v1451_v30, %v1452_v20  ;;  %v1778_v9 = vmax.f32 %v1746_v46, 0.0 }
 0x35b   :  { %v3775_v5 = vpop.permute.xlu1 %1194  ;;  %v1575_v11 = vpop.permute.xlu0 %1574  ;;  %v1515_v15 = vadd.f32 %v1463_v60, %v1322_v63  ;;  %v1516_v27 = vadd.f32 %v1462_v56, %v1323_v29 }
 0x35c   :  { %v1644_v44 = vrot.slane %v1575_v11, 4  ;;  %v1925_v8 = vrot.slane %v1924_v18, 2  ;;  %v1261_v28 = vrot.slane %v3775_v5, 2 }
 0x35e   :  { %v1656_v34 = vsel %vm1650_vm5, %v1643_v10, %v1644_v44  ;;  %v1926_v14 = vmax.f32 %v1924_v18, %v1925_v8  ;;  %v1655_v39 = vsel %vm1650_vm5, %v1644_v44, %v1645_v31 }
 0x35f   :  { %v3786_v61 = vpop.permute.xlu1 %1387  ;;  %v998_v17 = vpop.permute.xlu0 %997  ;;  %v1708_v22 = vadd.f32 %v1656_v34, %v1515_v15  ;;  %v1709_v2 = vadd.f32 %v1655_v39, %v1516_v27 }
 0x360   :  { %v1927_v54 = vrot.slane %v1926_v14, 1  ;;  %v1065_v3 = vrot.slane %v998_v17, 1  ;;  %v1454_v35 = vrot.slane %v3786_v61, 3 }
 0x361   :  { %v1747_v45 = vadd.f32 %v3707_v47, %v1708_v22  ;;  %v1748_v16 = vadd.f32 %v3707_v47, %v1709_v2 }
 0x362   :  { %v1928_v37 = vmax.f32 %v1926_v14, %v1927_v54  ;;  %v1075_v59 = vsel %vm1071_vm0, %v1064_v7, %v1065_v3 }
 0x363   :  { %v3794_v55 = vpop.permute.xlu1 %1580  ;;  %v1193_v50 = vpop.permute.xlu0 %1192  ;;  %v1779_v53 = vmax.f32 %v1747_v45, 0.0  ;;  %v1131_v51 = vadd.f32 %v3294_v58, %v1075_v59  ;;  %v1780_v6 = vmax.f32 %v1748_v16, 0.0  ;;  %v3821_v58 = vld [vmem:[%s3901_s4] sm:$0xff]  ;;  %v3912_v45 = vrot.slane %v2937_v40, 2 }
 0x364   :  { %v1260_v23 = vrot.slane %v1193_v50, 2  ;;  %v3799_v1 = vsel %vm1995_vm10, %v1928_v37, %v2006_v24  ;;  %v1074_v24 = vsel %vm1071_vm0, %v1065_v3, %v1066_v43  ;;  %v1812_v11 = vmul.f32 %v3821_v58, %v1778_v9 }
 0x365   :  { %v1813_v18 = vmul.f32 %v3745_v48, %v1779_v53  ;;  %v1132_v60 = vadd.f32 %v1074_v24, %v3394_v19  ;;  %v1647_v10 = vrot.slane %v3794_v55, 4  ;;  %v1814_v29 = vmul.f32 %v3821_v58, %v1780_v6 }
 0x366   :  { %v1268_v12 = vsel %vm1264_vm4, %v1259_v33, %v1260_v23  ;;  %v1267_v4 = vsel %vm1264_vm4, %v1260_v23, %v1261_v28  ;;  %v1929_v22 = vsel %vm1820_vm7, %v1812_v11, -inf  ;;  %v3913_v9 = vrot.slane %v2945_v42, 3 }
 0x367   :  { %v1386_v0 = vpop.permute.xlu1 %1385  ;;  %v1004_v49 = vpop.permute.xlu0 %1003  ;;  %v1324_v63 = vadd.f32 %v1268_v12, %v1131_v51  ;;  %v1325_v44 = vadd.f32 %v1267_v4, %v1132_v60  ;;  %v1930_v61 = vsel %vm1820_vm7, %v1813_v18, -inf  ;;  %v1938_v55 = vsel %vm1820_vm7, %v1814_v29, -inf }
 0x368   :  { %v1453_v30 = vrot.slane %v1386_v0, 3  ;;  %v1068_v32 = vrot.slane %v1004_v49, 1  ;;  %v1931_v2 = vmax.f32 %v1929_v22, %v1930_v61 }
 0x36a   :  { %v1461_v7 = vsel %vm1457_vm6, %v1452_v20, %v1453_v30  ;;  %v1460_v20 = vsel %vm1457_vm6, %v1453_v30, %v1454_v35 }
 0x36b   :  { %v1579_v33 = vpop.permute.xlu1 %1578  ;;  %v1002_v25 = vpop.permute.xlu0 %1001  ;;  %v1517_v52 = vadd.f32 %v1461_v7, %v1324_v63  ;;  %v1518_v17 = vadd.f32 %v1460_v20, %v1325_v44  ;;  %v1932_v63 = vrot.slane %v1931_v2, 4  ;;  %v3914_v20 = vrot.slane %v2943_v41, 4 }
 0x36c   :  { %v1646_v5 = vrot.slane %v1579_v33, 4  ;;  %v1067_v19 = vrot.slane %v1002_v25, 1 }
 0x36e   :  { %v1654_v8 = vsel %vm1650_vm5, %v1645_v31, %v1646_v5  ;;  %v1653_v56 = vsel %vm1650_vm5, %v1646_v5, %v1647_v10  ;;  %v3911_v31 = vrot.slane %v2929_v38, 1  ;;  %v1072_v3 = vsel %vm1071_vm0, %v1067_v19, %v1068_v32 }
 0x36f   :  { %v1710_v15 = vadd.f32 %v1654_v8, %v1517_v52  ;;  %v1199_v34 = vpop.permute.xlu1 %1198  ;;  %v1197_v14 = vpop.permute.xlu0 %1196  ;;  %v1711_v27 = vadd.f32 %v1653_v56, %v1518_v17  ;;  %v1073_v37 = vsel %vm1071_vm0, %v1066_v43, %v1067_v19  ;;  %v1134_v40 = vadd.f32 %v1072_v3, %v3449_v21 }
 0x370   :  { %v1263_v13 = vrot.slane %v1199_v34, 2  ;;  %v1262_v39 = vrot.slane %v1197_v14, 2  ;;  %v1103_v54 = vsel %vm1071_vm0, %v1068_v32, %v3911_v31  ;;  %v1133_v12 = vadd.f32 %v3341_v26, %v1073_v37 }
 0x371   :  { %v1749_v36 = vadd.f32 %v3707_v47, %v1710_v15  ;;  %v1135_v43 = vadd.f32 %v3426_v62, %v1103_v54  ;;  %v1750_v30 = vadd.f32 %v3707_v47, %v1711_v27  ;;  %v1933_v56 = vmax.f32 %v1931_v2, %v1932_v63 }
 0x372   :  { %v1296_v23 = vsel %vm1264_vm4, %v1263_v13, %v3912_v45  ;;  %v1265_v59 = vsel %vm1264_vm4, %v1262_v39, %v1263_v13  ;;  %v1266_v16 = vsel %vm1264_vm4, %v1261_v28, %v1262_v39 }
 0x373   :  { %v1781_v50 = vmax.f32 %v1749_v36, 0.0  ;;  %v1392_v38 = vpop.permute.xlu1 %1391  ;;  %v1390_v46 = vpop.permute.xlu0 %1389  ;;  %v1328_v7 = vadd.f32 %v1296_v23, %v1135_v43  ;;  %v1326_v6 = vadd.f32 %v1266_v16, %v1133_v12  ;;  %v1327_v26 = vadd.f32 %v1265_v59, %v1134_v40 }
 0x374   :  { %v1456_v0 = vrot.slane %v1392_v38, 3  ;;  %v1455_v49 = vrot.slane %v1390_v46, 3  ;;  %v1782_v32 = vmax.f32 %v1750_v30, 0.0  ;;  %v1934_v22 = vrot.slane %v1933_v56, 2 }
 0x375   :  { %v1815_v53 = vmul.f32 %v3745_v48, %v1781_v50 }
 0x376   :  { %v1489_v24 = vsel %vm1457_vm6, %v1456_v0, %v3913_v9  ;;  %v1458_v28 = vsel %vm1457_vm6, %v1455_v49, %v1456_v0  ;;  %v1459_v51 = vsel %vm1457_vm6, %v1454_v35, %v1455_v49  ;;  %v1816_v61 = vmul.f32 %v3821_v58, %v1782_v32 }
 0x377   :  { %v1939_v62 = vsel %vm1820_vm7, %v1815_v53, -inf  ;;  %v1585_v4 = vpop.permute.xlu1 %1584  ;;  %v1583_v21 = vpop.permute.xlu0 %1582  ;;  %v1521_v18 = vadd.f32 %v1489_v24, %v1328_v7  ;;  %v1519_v60 = vadd.f32 %v1459_v51, %v1326_v6  ;;  %v1520_v5 = vadd.f32 %v1458_v28, %v1327_v26  ;;  %v2206_v7 = vld [vmem:[%s3903_s6] ss:$0 sm:$0xff] }
 0x378   :  { %v1940_v33 = vmax.f32 %v1938_v55, %v1939_v62  ;;  %v1649_v25 = vrot.slane %v1585_v4, 4  ;;  %v1648_v42 = vrot.slane %v1583_v21, 4  ;;  %v1947_v54 = vsel %vm1820_vm7, %v1816_v61, -inf }
 0x379   :  { %v1935_v37 = vmax.f32 %v1933_v56, %v1934_v22 }
 0x37a   :  { %v1941_v11 = vrot.slane %v1940_v33, 4  ;;  %v1682_v35 = vsel %vm1650_vm5, %v1649_v25, %v3914_v20  ;;  %v1651_v52 = vsel %vm1650_vm5, %v1648_v42, %v1649_v25  ;;  %v1652_v44 = vsel %vm1650_vm5, %v1647_v10, %v1648_v42 }
 0x37b   :  { %v1714_v8 = vadd.f32 %v1682_v35, %v1521_v18  ;;  %v1712_v19 = vadd.f32 %v1652_v44, %v1519_v60  ;;  %v1713_v29 = vadd.f32 %v1651_v52, %v1520_v5  ;;  %v1936_v38 = vrot.slane %v1935_v37, 1 }
 0x37c   :  { %v1942_v15 = vmax.f32 %v1940_v33, %v1941_v11 }
 0x37d   :  { %v1753_v34 = vadd.f32 %v3707_v47, %v1714_v8  ;;  %v1751_v14 = vadd.f32 %v3707_v47, %v1712_v19  ;;  %v1752_v41 = vadd.f32 %v3707_v47, %v1713_v29  ;;  %v1937_v0 = vmax.f32 %v1935_v37, %v1936_v38 }
 0x37e   :  { %v1943_v57 = vrot.slane %v1942_v15, 2 }
 0x37f   :  { %v1785_v17 = vmax.f32 %v1753_v34, 0.0  ;;  %v1783_v13 = vmax.f32 %v1751_v14, 0.0  ;;  %v1784_v39 = vmax.f32 %v1752_v41, 0.0  ;;  %v2008_v24 = vsel %vm1997_vm11, %v1937_v0, %v3799_v1 }
 0x380   :  { %v1944_v50 = vmax.f32 %v1942_v15, %v1943_v57 }
 0x381   :  { %v1819_v10 = vmul.f32 %v3745_v48, %v1785_v17  ;;  %v1817_v36 = vmul.f32 %v3745_v48, %v1783_v13  ;;  %v1818_v31 = vmul.f32 %v3821_v58, %v1784_v39 }
 0x382   :  { %v1945_v48 = vrot.slane %v1944_v50, 1 }
 0x383   :  { %v1957_v27 = vsel %vm1820_vm7, %v1819_v10, -inf  ;;  %v1948_v3 = vsel %vm1820_vm7, %v1817_v36, -inf  ;;  %v1956_v47 = vsel %vm1820_vm7, %v1818_v31, -inf }
 0x384   :  { %v1949_v2 = vmax.f32 %v1947_v54, %v1948_v3  ;;  %v1958_v55 = vmax.f32 %v1956_v47, %v1957_v27  ;;  %v1946_v53 = vmax.f32 %v1944_v50, %v1945_v48 }
 0x386   :  { %v1950_v45 = vrot.slane %v1949_v2, 4  ;;  %v1959_v23 = vrot.slane %v1958_v55, 4  ;;  %v2009_v28 = vsel %vm1999_vm12, %v1946_v53, %v2008_v24 }
 0x388   :  { %v1951_v46 = vmax.f32 %v1949_v2, %v1950_v45  ;;  %v1960_v59 = vmax.f32 %v1958_v55, %v1959_v23 }
 0x38a   :  { %v1952_v16 = vrot.slane %v1951_v46, 2  ;;  %v1961_v58 = vrot.slane %v1960_v59, 2 }
 0x38c   :  { %v1953_v49 = vmax.f32 %v1951_v46, %v1952_v16  ;;  %v1962_v43 = vmax.f32 %v1960_v59, %v1961_v58 }
 0x38e   :  { %v1954_v12 = vrot.slane %v1953_v49, 1  ;;  %v1963_v40 = vrot.slane %v1962_v43, 1 }
 0x390   :  { %v1955_v30 = vmax.f32 %v1953_v49, %v1954_v12  ;;  %v1964_v9 = vmax.f32 %v1962_v43, %v1963_v40 }
 0x392   :  { %v2010_v51 = vsel %vm2001_vm13, %v1955_v30, %v2009_v28 }
 0x393   :  { %v2011_v62 = vsel %vm2003_vm14, %v1964_v9, %v2010_v51 }
 0x394   :  { %2417 = vmatmul.mubr.msk.f32.vlgmr.msra.gmra.mxu1 %vm1820_vm7, %v2011_v62 }
 0x454   :  { %v2418_v6 = vpop.f32.mrf.mxu1 }
 0x455   :  { %v2088_v26 = vadd.f32 %v2418_v6, %v2206_v7 }
 0x456   :  { %v2082_v4 = vpop.f32.mrf.mxu1 }
 0x457   :  { %2092 = vst [vmem:[#allocation2 + $0x8] sm:$0xff] %v2088_v26  ;;  %v2083_v21 = vadd.f32 %v2206_v7, %v2082_v4 }
 0x459   :  { %2091 = vst [vmem:[#allocation2] sm:$0xff] %v2083_v21 }
 0x45a   :  { %2444 = shalt.err (!%p2441_p4)
}
 0x45b   :  { %s2462_s15 = smov 128   ;;  %s2463_s16 = smov 8  }
 0x45c   :  { %2104 = dma.vmem_to_hbm [thread:$0]  %s2099_s0, 256, %s3904_s7, [#allocation3], %s2462_s15, %s2462_s15, %s2463_s16  }
 0x45d   :  { %2453 = dma.done.wait [#allocation3], 256  }
 0x45e   :  { %2454 = vsyncadd [#allocation3], 4294967040 }
 0x45f   :  { %2108 = vsyncpa [#allocation3], 1 }

</bundles_post_ra>
